<compile_context>
chip_gen: v7x
topology: tpu7x:2x2x1
jax: 0.10.0
libtpu: 0.0.40
codegen_flags: <defaults>
</compile_context>

<pallas_src>
import math

import jax
import jax.numpy as jnp
import numpy as np
from jax import lax
from jax.experimental import pallas as pl
from jax.experimental.pallas import tpu as pltpu

# ---- hyperparameters mirroring the module's `args` ----
D_K = D_V = 16        # args.aemb
N_HEADS = 2           # args.speaker_head_num
D_FF = 64             # args.proj_hidden
N_LAYERS = 2          # args.speaker_layer_num
WORD_SIZE = 32        # embedding / Q size of the decoder
HIDDEN_SIZE = 64      # encoder output size (K size)
TGT_VOCAB = 50
PAD_IDX = 0
LN_EPS = 1e-5         # torch.nn.LayerNorm default (gamma=1, beta=0 per reference)
NEG_INF = -1e9


# ---------------------------------------------------------------------------
# in-kernel helpers (traced inline inside the Pallas kernel)
# ---------------------------------------------------------------------------
def _layer_norm(x):
    mu = jnp.mean(x, axis=-1, keepdims=True)
    var = jnp.mean((x - mu) ** 2, axis=-1, keepdims=True)
    return (x - mu) * lax.rsqrt(var + LN_EPS)


def _softmax_last(x):
    m = jnp.max(x, axis=-1, keepdims=True)
    e = jnp.exp(x - m)
    return e / jnp.sum(e, axis=-1, keepdims=True)


def _mha(q_in, kv_in, mask, wq, wk, wv, wo):
    """Head-batched multi-head attention + residual + LayerNorm.

    q_in : (T, Dq)      kv_in: (S, Dkv)     mask: (T, S) bool (True == masked)
    wq   : (H, Dq, dk)  wk/wv: (H, Dkv, dk/dv)   wo: (H, dv, Dq)
    Returns (out (T, Dq), attn (H, T, S)).
    """
    H = wq.shape[0]
    T, Dq = q_in.shape
    S = kv_in.shape[0]

    qb = jnp.broadcast_to(q_in[None, :, :], (H, T, Dq))
    kb = jnp.broadcast_to(kv_in[None, :, :], (H, S, kv_in.shape[1]))

    proj = (((2,), (1,)), ((0,), (0,)))     # contract feature, batch over heads
    Q = lax.dot_general(qb, wq, proj, preferred_element_type=jnp.float32)  # (H,T,dk)
    K = lax.dot_general(kb, wk, proj, preferred_element_type=jnp.float32)  # (H,S,dk)
    V = lax.dot_general(kb, wv, proj, preferred_element_type=jnp.float32)  # (H,S,dv)

    scores = lax.dot_general(Q, K, (((2,), (2,)), ((0,), (0,))),
                             preferred_element_type=jnp.float32)           # (H,T,S)
    scores = scores * (1.0 / math.sqrt(D_K))
    scores = jnp.where(mask[None, :, :], NEG_INF, scores)
    attn = _softmax_last(scores)                                           # (H,T,S)

    ctx = lax.dot_general(attn, V, (((2,), (1,)), ((0,), (0,))),
                          preferred_element_type=jnp.float32)              # (H,T,dv)
    out_h = lax.dot_general(ctx, wo, (((2,), (1,)), ((0,), (0,))),
                            preferred_element_type=jnp.float32)            # (H,T,Dq)
    out = jnp.sum(out_h, axis=0)             # == concat(ctx_heads) @ wo_full
    return _layer_norm(out + q_in), attn


# ---------------------------------------------------------------------------
# Pallas kernel: one (batch element, decoder layer) grid step.
# The decoder state is carried across the layer axis in the resident out_ref.
# Weight refs hold the full (L, ...) stacks (VMEM resident, fetched once);
# the layer slice is selected in-kernel with the dynamic layer id.
# ---------------------------------------------------------------------------
def pasts_decoder_kernel(dec_ref, enc_ref, pad_ref, ctx_ref,
                         wq1_ref, wk1_ref, wv1_ref, wo1_ref,
                         wq2_ref, wk2_ref, wv2_ref, wo2_ref,
                         wf1_ref, wf2_ref,
                         out_ref, sattn_ref, cattn_ref):
    l = pl.program_id(1)

    @pl.when(l == 0)
    def _():
        out_ref[...] = dec_ref[...]      # seed the carried decoder state

    x = out_ref[0]        # (T, Dq)  current decoder state (resident in VMEM)
    enc = enc_ref[0]      # (S, De)
    T = x.shape[0]
    S = enc.shape[0]

    # masks built in-kernel from compact pad vectors (1.0 == pad / masked)
    row = lax.broadcasted_iota(jnp.int32, (T, T), 0)
    col = lax.broadcasted_iota(jnp.int32, (T, T), 1)
    smask = jnp.logical_or(pad_ref[0] > 0.0, col > row)          # (T, T)
    cmask = jnp.broadcast_to(ctx_ref[0] > 0.0, (T, S))           # (T, S)

    # 1) masked self-attention + residual + LN
    x1, sattn = _mha(x, x, smask,
                     wq1_ref[l], wk1_ref[l], wv1_ref[l], wo1_ref[l])
    # 2) decoder-encoder cross-attention + residual + LN
    x2, cattn = _mha(x1, enc, cmask,
                     wq2_ref[l], wk2_ref[l], wv2_ref[l], wo2_ref[l])
    # 3) position-wise FFN (Linear -> ReLU -> Linear) + residual + LN
    h = jnp.maximum(jnp.dot(x2, wf1_ref[l],
                            preferred_element_type=jnp.float32), 0.0)
    ff = jnp.dot(h, wf2_ref[l], preferred_element_type=jnp.float32)
    x3 = _layer_norm(ff + x2)

    out_ref[0] = x3
    sattn_ref[0] = sattn      # (H, T, T)
    cattn_ref[0] = cattn      # (H, T, S)


def _pallas_decoder(dec_emb, enc_outputs, dec_pad, ctx_pad, params):
    """dec_emb (B,T,Dq), enc_outputs (B,S,De), dec_pad (B,1,T), ctx_pad (B,1,S)."""
    B, T, Dq = dec_emb.shape
    S, De = enc_outputs.shape[1], enc_outputs.shape[2]
    L = params["wq1"].shape[0]
    H = N_HEADS

    names = ("wq1", "wk1", "wv1", "wo1",
             "wq2", "wk2", "wv2", "wo2",
             "wf1", "wf2")
    weights = [params[k] for k in names]

    def w_spec_resident(w):
        # Full-array block + constant index map -> DMA'd into VMEM once for
        # the whole grid; the kernel selects the layer slice dynamically.
        nd = w.ndim
        return pl.BlockSpec(w.shape, lambda b, l, _nd=nd: (0,) * _nd)

    w_specs = [w_spec_resident(w) for w in weights]

    out_shapes = (
        jax.ShapeDtypeStruct((B, T, Dq), jnp.float32),
        jax.ShapeDtypeStruct((B * L, H, T, T), jnp.float32),
        jax.ShapeDtypeStruct((B * L, H, T, S), jnp.float32),
    )

    fn = pl.pallas_call(
        pasts_decoder_kernel,
        out_shape=out_shapes,
        grid_spec=pltpu.PrefetchScalarGridSpec(
            num_scalar_prefetch=0,
            grid=(B, L),
            in_specs=[
                pl.BlockSpec((1, T, Dq), lambda b, l: (b, 0, 0)),
                pl.BlockSpec((1, S, De), lambda b, l: (b, 0, 0)),
                pl.BlockSpec((1, 1, T), lambda b, l: (b, 0, 0)),
                pl.BlockSpec((1, 1, S), lambda b, l: (b, 0, 0)),
            ] + w_specs,
            out_specs=[
                pl.BlockSpec((1, T, Dq), lambda b, l: (b, 0, 0)),          # carried
                pl.BlockSpec((1, H, T, T), lambda b, l: (b * L + l, 0, 0, 0)),
                pl.BlockSpec((1, H, T, S), lambda b, l: (b * L + l, 0, 0, 0)),
            ],
        ),
        compiler_params=pltpu.CompilerParams(
            dimension_semantics=("parallel", "arbitrary")),
    )
    return fn(dec_emb, enc_outputs, dec_pad, ctx_pad, *weights)


# ---------------------------------------------------------------------------
# host-side glue: embedding lookup, positional encoding, mask prep (all jitted)
# ---------------------------------------------------------------------------
def positional_encoding_table(max_len, d_model):
    pe = np.zeros((max_len, d_model), dtype=np.float32)
    position = np.arange(0, max_len, dtype=np.float32)[:, None]
    div_term = np.exp(np.arange(0, d_model, 2, dtype=np.float32)
                      * (-math.log(10000.0) / d_model))
    pe[:, 0::2] = np.sin(position * div_term)
    pe[:, 1::2] = np.cos(position * div_term)
    return jnp.asarray(pe)


def init_params(key):
    def lin(k, shape, scale=0.05):
        return scale * jax.random.normal(k, shape, jnp.float32)

    keys = jax.random.split(key, 11)
    emb = 0.05 * jax.random.normal(keys[0], (TGT_VOCAB, WORD_SIZE), jnp.float32)
    emb = emb.at[PAD_IDX].set(0.0)   # nn.Embedding padding_idx row is zero

    L, H = N_LAYERS, N_HEADS
    params = {
        # per-head weight layout (H, din, dout) == contiguous head blocks of the
        # reference nn.Linear weights; wo per-head slabs sum == concat @ fc.
        "wq1": lin(keys[1], (L, H, WORD_SIZE, D_K)),
        "wk1": lin(keys[2], (L, H, WORD_SIZE, D_K)),
        "wv1": lin(keys[3], (L, H, WORD_SIZE, D_V)),
        "wo1": lin(keys[4], (L, H, D_V, WORD_SIZE)),
        "wq2": lin(keys[5], (L, H, WORD_SIZE, D_K)),
        "wk2": lin(keys[6], (L, H, HIDDEN_SIZE, D_K)),
        "wv2": lin(keys[7], (L, H, HIDDEN_SIZE, D_V)),
        "wo2": lin(keys[8], (L, H, D_V, WORD_SIZE)),
        "wf1": lin(keys[9], (L, WORD_SIZE, D_FF)),
        "wf2": lin(keys[10], (L, D_FF, WORD_SIZE)),
    }
    return emb, params


@jax.jit
def pasts_decoder_forward(dec_inputs, enc_outputs, ctx_mask,
                          emb_table, pe_table, params):
    B, T = dec_inputs.shape
    S = enc_outputs.shape[1]
    L = params["wq1"].shape[0]
    H = params["wq1"].shape[1]

    # embedding lookup + positional encoding (XLA glue, fused under jit)
    dec_emb = emb_table[dec_inputs] + pe_table[:T][None, :, :]   # (B,T,WORD_SIZE)

    # compact pad vectors; full causal+pad masks are built inside the kernel
    dec_pad = (dec_inputs == PAD_IDX).astype(jnp.float32)[:, None, :]  # (B,1,T)
    ctx_pad = ctx_mask.astype(jnp.float32)[:, None, :]                 # (B,1,S)

    dec_out, sattn_flat, cattn_flat = _pallas_decoder(
        dec_emb, enc_outputs, dec_pad, ctx_pad, params)

    sattn = sattn_flat.reshape(B, L, H, T, T)
    cattn = cattn_flat.reshape(B, L, H, T, S)
    self_attns = tuple(sattn[:, i] for i in range(L))
    enc_attns = tuple(cattn[:, i] for i in range(L))
    return dec_out, self_attns, enc_attns


if __name__ == "__main__":
    key = jax.random.PRNGKey(0)
    k_par, k_tok, k_enc = jax.random.split(key, 3)

    B, T, S = 2, 8, 10

    emb_table, params = init_params(k_par)
    pe_table = positional_encoding_table(5000, WORD_SIZE)   # hoisted, built once

    # decoder token ids (0 == padding) — pad the tail of each sequence
    dec_inputs = jax.random.randint(k_tok, (B, T), 1, TGT_VOCAB, dtype=jnp.int32)
    dec_inputs = dec_inputs.at[0, 6:].set(0)
    dec_inputs = dec_inputs.at[1, 7:].set(0)

    enc_outputs = jax.random.normal(k_enc, (B, S, HIDDEN_SIZE), jnp.float32)

    # ctx_mask: 1 where the encoder position is padding (to be masked out)
    ctx_mask = jnp.zeros((B, S), jnp.float32)
    ctx_mask = ctx_mask.at[0, 8:].set(1.0)
    ctx_mask = ctx_mask.at[1, 9:].set(1.0)

    dec_out, self_attns, enc_attns = pasts_decoder_forward(
        dec_inputs, enc_outputs, ctx_mask, emb_table, pe_table, params)

    jax.block_until_ready(dec_out)
    for a in self_attns + enc_attns:
        jax.block_until_ready(a)

    assert dec_out.shape == (B, T, WORD_SIZE)
    assert len(self_attns) == N_LAYERS and len(enc_attns) == N_LAYERS
    assert self_attns[0].shape == (B, N_HEADS, T, T)
    assert enc_attns[0].shape == (B, N_HEADS, T, S)
    assert bool(jnp.all(jnp.isfinite(dec_out)))
    # per-row softmax of attention sums to 1 (sanity on the in-kernel masks)
    assert bool(jnp.allclose(jnp.sum(self_attns[0], axis=-1), 1.0, atol=1e-4))
    # TODO(synk): args.use_drop dropout paths are eval-mode identity (no RNG dropout in kernel).
    print("KERNEL_OK")
</pallas_src>

<mosaic_0001>
module attributes {stable_mosaic.version = 11 : i64} {
  func.func @pasts_decoder_kernel(%arg0: i32, %arg1: i32, %arg2: memref<1x8x32xf32, #tpu.memory_space<vmem>>, %arg3: memref<1x10x64xf32, #tpu.memory_space<vmem>>, %arg4: memref<1x1x8xf32, #tpu.memory_space<vmem>>, %arg5: memref<1x1x10xf32, #tpu.memory_space<vmem>>, %arg6: memref<2x2x32x16xf32, #tpu.memory_space<vmem>>, %arg7: memref<2x2x32x16xf32, #tpu.memory_space<vmem>>, %arg8: memref<2x2x32x16xf32, #tpu.memory_space<vmem>>, %arg9: memref<2x2x16x32xf32, #tpu.memory_space<vmem>>, %arg10: memref<2x2x32x16xf32, #tpu.memory_space<vmem>>, %arg11: memref<2x2x64x16xf32, #tpu.memory_space<vmem>>, %arg12: memref<2x2x64x16xf32, #tpu.memory_space<vmem>>, %arg13: memref<2x2x16x32xf32, #tpu.memory_space<vmem>>, %arg14: memref<2x32x64xf32, #tpu.memory_space<vmem>>, %arg15: memref<2x64x32xf32, #tpu.memory_space<vmem>>, %arg16: memref<1x8x32xf32, #tpu.memory_space<vmem>>, %arg17: memref<1x2x8x8xf32, #tpu.memory_space<vmem>>, %arg18: memref<1x2x8x10xf32, #tpu.memory_space<vmem>>) attributes {dimension_semantics = [#tpu.dimension_semantics<parallel>, #tpu.dimension_semantics<arbitrary>], iteration_bounds = array<i64: 2, 2>, scalar_prefetch = 0 : i64, scratch_operands = 0 : i64, tpu.core_type = #tpu.core_type<tc>, window_params = [{transform_indices = @transform_0, window_bounds = array<i64: 1, 8, 32>}, {transform_indices = @transform_1, window_bounds = array<i64: 1, 10, 64>}, {transform_indices = @transform_2, window_bounds = array<i64: 1, 1, 8>}, {transform_indices = @transform_3, window_bounds = array<i64: 1, 1, 10>}, {pipeline_mode = #tpu.pipeline_mode<synchronous>, transform_indices = @transform_4, window_bounds = array<i64: 2, 2, 32, 16>}, {pipeline_mode = #tpu.pipeline_mode<synchronous>, transform_indices = @transform_5, window_bounds = array<i64: 2, 2, 32, 16>}, {pipeline_mode = #tpu.pipeline_mode<synchronous>, transform_indices = @transform_6, window_bounds = array<i64: 2, 2, 32, 16>}, {pipeline_mode = #tpu.pipeline_mode<synchronous>, transform_indices = @transform_7, window_bounds = array<i64: 2, 2, 16, 32>}, {pipeline_mode = #tpu.pipeline_mode<synchronous>, transform_indices = @transform_8, window_bounds = array<i64: 2, 2, 32, 16>}, {pipeline_mode = #tpu.pipeline_mode<synchronous>, transform_indices = @transform_9, window_bounds = array<i64: 2, 2, 64, 16>}, {pipeline_mode = #tpu.pipeline_mode<synchronous>, transform_indices = @transform_10, window_bounds = array<i64: 2, 2, 64, 16>}, {pipeline_mode = #tpu.pipeline_mode<synchronous>, transform_indices = @transform_11, window_bounds = array<i64: 2, 2, 16, 32>}, {pipeline_mode = #tpu.pipeline_mode<synchronous>, transform_indices = @transform_12, window_bounds = array<i64: 2, 32, 64>}, {pipeline_mode = #tpu.pipeline_mode<synchronous>, transform_indices = @transform_13, window_bounds = array<i64: 2, 64, 32>}, {transform_indices = @transform_14, window_bounds = array<i64: 1, 8, 32>}, {transform_indices = @transform_15, window_bounds = array<i64: 1, 2, 8, 8>}, {transform_indices = @transform_16, window_bounds = array<i64: 1, 2, 8, 10>}]} {
    %c0_i32 = arith.constant 0 : i32
    %0 = arith.cmpi eq, %arg1, %c0_i32 : i32
    %1 = arith.extui %0 : i1 to i32
    %c0_i32_0 = arith.constant 0 : i32
    %2 = arith.cmpi ne, %1, %c0_i32_0 : i32
    scf.if %2 {
      %c0_92 = arith.constant 0 : index
      %c0_93 = arith.constant 0 : index
      %c0_94 = arith.constant 0 : index
      %180 = vector.load %arg2[%c0_92, %c0_93, %c0_94] : memref<1x8x32xf32, #tpu.memory_space<vmem>>, vector<1x8x32xf32>
      %c0_95 = arith.constant 0 : index
      %c0_96 = arith.constant 0 : index
      %c0_97 = arith.constant 0 : index
      %181 = vector.load %arg16[%c0_95, %c0_96, %c0_97] : memref<1x8x32xf32, #tpu.memory_space<vmem>>, vector<1x8x32xf32>
      tpu.vector_store %arg16[%c0_95, %c0_96, %c0_97], %180 {strides = array<i32>} : memref<1x8x32xf32, #tpu.memory_space<vmem>>, vector<1x8x32xf32>,
    } else {
    }
    %c0 = arith.constant 0 : index
    %c0_1 = arith.constant 0 : index
    %c0_2 = arith.constant 0 : index
    %3 = vector.load %arg16[%c0, %c0_1, %c0_2] : memref<1x8x32xf32, #tpu.memory_space<vmem>>, vector<1x8x32xf32>
    %4 = vector.shape_cast %3 : vector<1x8x32xf32> to vector<8x32xf32>
    %c0_3 = arith.constant 0 : index
    %c0_4 = arith.constant 0 : index
    %c0_5 = arith.constant 0 : index
    %5 = vector.load %arg3[%c0_3, %c0_4, %c0_5] : memref<1x10x64xf32, #tpu.memory_space<vmem>>, vector<1x10x64xf32>
    %6 = vector.shape_cast %5 : vector<1x10x64xf32> to vector<10x64xf32>
    %7 = tpu.iota {dimensions = array<i32: 0>} : vector<8x8xi32>
    %8 = tpu.iota {dimensions = array<i32: 1>} : vector<8x8xi32>
    %c0_6 = arith.constant 0 : index
    %c0_7 = arith.constant 0 : index
    %c0_8 = arith.constant 0 : index
    %9 = vector.load %arg4[%c0_6, %c0_7, %c0_8] : memref<1x1x8xf32, #tpu.memory_space<vmem>>, vector<1x1x8xf32>
    %10 = vector.shape_cast %9 : vector<1x1x8xf32> to vector<1x8xf32>
    %cst = arith.constant 0.000000e+00 : f32
    %11 = vector.broadcast %cst : f32 to vector<1x8xf32>
    %12 = arith.cmpf ogt, %10, %11 : vector<1x8xf32>
    %13 = arith.cmpi sgt, %8, %7 : vector<8x8xi32>
    %14 = vector.broadcast %12 : vector<1x8xi1> to vector<8x8xi1>
    %15 = arith.ori %14, %13 : vector<8x8xi1>
    %c0_9 = arith.constant 0 : index
    %c0_10 = arith.constant 0 : index
    %c0_11 = arith.constant 0 : index
    %16 = vector.load %arg5[%c0_9, %c0_10, %c0_11] : memref<1x1x10xf32, #tpu.memory_space<vmem>>, vector<1x1x10xf32>
    %17 = vector.shape_cast %16 : vector<1x1x10xf32> to vector<1x10xf32>
    %cst_12 = arith.constant 0.000000e+00 : f32
    %18 = vector.broadcast %cst_12 : f32 to vector<1x10xf32>
    %19 = arith.cmpf ogt, %17, %18 : vector<1x10xf32>
    %20 = vector.shape_cast %19 : vector<1x10xi1> to vector<1x10xi1>
    %21 = vector.broadcast %20 : vector<1x10xi1> to vector<8x10xi1>
    %22 = arith.index_cast %arg1 : i32 to index
    %c0_13 = arith.constant 0 : index
    %c0_14 = arith.constant 0 : index
    %c0_15 = arith.constant 0 : index
    %23 = vector.load %arg6[%22, %c0_13, %c0_14, %c0_15] : memref<2x2x32x16xf32, #tpu.memory_space<vmem>>, vector<1x2x32x16xf32>
    %24 = vector.shape_cast %23 : vector<1x2x32x16xf32> to vector<2x32x16xf32>
    %25 = arith.index_cast %arg1 : i32 to index
    %c0_16 = arith.constant 0 : index
    %c0_17 = arith.constant 0 : index
    %c0_18 = arith.constant 0 : index
    %26 = vector.load %arg7[%25, %c0_16, %c0_17, %c0_18] : memref<2x2x32x16xf32, #tpu.memory_space<vmem>>, vector<1x2x32x16xf32>
    %27 = vector.shape_cast %26 : vector<1x2x32x16xf32> to vector<2x32x16xf32>
    %28 = arith.index_cast %arg1 : i32 to index
    %c0_19 = arith.constant 0 : index
    %c0_20 = arith.constant 0 : index
    %c0_21 = arith.constant 0 : index
    %29 = vector.load %arg8[%28, %c0_19, %c0_20, %c0_21] : memref<2x2x32x16xf32, #tpu.memory_space<vmem>>, vector<1x2x32x16xf32>
    %30 = vector.shape_cast %29 : vector<1x2x32x16xf32> to vector<2x32x16xf32>
    %31 = arith.index_cast %arg1 : i32 to index
    %c0_22 = arith.constant 0 : index
    %c0_23 = arith.constant 0 : index
    %c0_24 = arith.constant 0 : index
    %32 = vector.load %arg9[%31, %c0_22, %c0_23, %c0_24] : memref<2x2x16x32xf32, #tpu.memory_space<vmem>>, vector<1x2x16x32xf32>
    %33 = vector.shape_cast %32 : vector<1x2x16x32xf32> to vector<2x16x32xf32>
    %34 = vector.shape_cast %4 : vector<8x32xf32> to vector<1x8x32xf32>
    %35 = vector.shape_cast %34 : vector<1x8x32xf32> to vector<1x8x32xf32>
    %36 = vector.broadcast %35 : vector<1x8x32xf32> to vector<2x8x32xf32>
    %37 = vector.shape_cast %4 : vector<8x32xf32> to vector<1x8x32xf32>
    %38 = vector.shape_cast %37 : vector<1x8x32xf32> to vector<1x8x32xf32>
    %39 = vector.broadcast %38 : vector<1x8x32xf32> to vector<2x8x32xf32>
    %cst_25 = arith.constant dense<0.000000e+00> : vector<2x8x16xf32>
    %40 = tpu.matmul %36, %24, %cst_25 {dimension_numbers = #tpu.dot_dimension_numbers<[2], [1], [1], [2], [0, 0, 0, 1, 1, 2], [0], [0]>} : vector<2x8x32xf32>, vector<2x32x16xf32>, vector<2x8x16xf32> -> vector<2x8x16xf32>
    %cst_26 = arith.constant dense<0.000000e+00> : vector<2x8x16xf32>
    %41 = tpu.matmul %39, %27, %cst_26 {dimension_numbers = #tpu.dot_dimension_numbers<[2], [1], [1], [2], [0, 0, 0, 1, 1, 2], [0], [0]>} : vector<2x8x32xf32>, vector<2x32x16xf32>, vector<2x8x16xf32> -> vector<2x8x16xf32>
    %cst_27 = arith.constant dense<0.000000e+00> : vector<2x8x16xf32>
    %42 = tpu.matmul %39, %30, %cst_27 {dimension_numbers = #tpu.dot_dimension_numbers<[2], [1], [1], [2], [0, 0, 0, 1, 1, 2], [0], [0]>} : vector<2x8x32xf32>, vector<2x32x16xf32>, vector<2x8x16xf32> -> vector<2x8x16xf32>
    %cst_28 = arith.constant dense<0.000000e+00> : vector<2x8x8xf32>
    %43 = tpu.matmul %40, %41, %cst_28 {dimension_numbers = #tpu.dot_dimension_numbers<[2], [2], [1], [1], [0, 0, 0, 1, 1, 1], [0], [0]>} : vector<2x8x16xf32>, vector<2x8x16xf32>, vector<2x8x8xf32> -> vector<2x8x8xf32>
    %cst_29 = arith.constant 2.500000e-01 : f32
    %44 = vector.broadcast %cst_29 : f32 to vector<2x8x8xf32>
    %45 = arith.mulf %43, %44 : vector<2x8x8xf32>
    %46 = vector.shape_cast %15 : vector<8x8xi1> to vector<1x8x8xi1>
    %cst_30 = arith.constant -1.000000e+09 : f32
    %47 = vector.shape_cast %46 : vector<1x8x8xi1> to vector<1x8x8xi1>
    %48 = vector.broadcast %47 : vector<1x8x8xi1> to vector<2x8x8xi1>
    %49 = vector.broadcast %cst_30 : f32 to vector<2x8x8xf32>
    %50 = arith.select %48, %49, %45 : vector<2x8x8xi1>, vector<2x8x8xf32>
    %cst_31 = arith.constant dense<0xFF800000> : vector<2x8xf32>
    %51 = vector.multi_reduction <maximumf>, %50, %cst_31 [2] : vector<2x8x8xf32> to vector<2x8xf32>
    %52 = vector.shape_cast %51 : vector<2x8xf32> to vector<2x8x1xf32>
    %53 = vector.broadcast %52 : vector<2x8x1xf32> to vector<2x8x8xf32>
    %54 = arith.subf %50, %53 : vector<2x8x8xf32>
    %55 = math.exp %54 : vector<2x8x8xf32>
    %cst_32 = arith.constant dense<0.000000e+00> : vector<2x8xf32>
    %56 = vector.multi_reduction <add>, %55, %cst_32 [2] : vector<2x8x8xf32> to vector<2x8xf32>
    %57 = vector.shape_cast %56 : vector<2x8xf32> to vector<2x8x1xf32>
    %58 = vector.broadcast %57 : vector<2x8x1xf32> to vector<2x8x8xf32>
    %59 = arith.divf %55, %58 : vector<2x8x8xf32>
    %cst_33 = arith.constant dense<0.000000e+00> : vector<2x8x16xf32>
    %60 = tpu.matmul %59, %42, %cst_33 {dimension_numbers = #tpu.dot_dimension_numbers<[2], [1], [1], [2], [0, 0, 0, 1, 1, 2], [0], [0]>} : vector<2x8x8xf32>, vector<2x8x16xf32>, vector<2x8x16xf32> -> vector<2x8x16xf32>
    %cst_34 = arith.constant dense<0.000000e+00> : vector<2x8x32xf32>
    %61 = tpu.matmul %60, %33, %cst_34 {dimension_numbers = #tpu.dot_dimension_numbers<[2], [1], [1], [2], [0, 0, 0, 1, 1, 2], [0], [0]>} : vector<2x8x16xf32>, vector<2x16x32xf32>, vector<2x8x32xf32> -> vector<2x8x32xf32>
    %cst_35 = arith.constant dense<0.000000e+00> : vector<8x32xf32>
    %62 = vector.multi_reduction <add>, %61, %cst_35 [0] : vector<2x8x32xf32> to vector<8x32xf32>
    %63 = arith.addf %62, %4 : vector<8x32xf32>
    %cst_36 = arith.constant dense<0.000000e+00> : vector<8xf32>
    %64 = vector.multi_reduction <add>, %63, %cst_36 [1] : vector<8x32xf32> to vector<8xf32>
    %65 = vector.shape_cast %64 : vector<8xf32> to vector<8x1xf32>
    %cst_37 = arith.constant 3.200000e+01 : f32
    %66 = vector.broadcast %cst_37 : f32 to vector<8x1xf32>
    %67 = arith.divf %65, %66 : vector<8x1xf32>
    %68 = vector.broadcast %67 : vector<8x1xf32> to vector<8x32xf32>
    %69 = arith.subf %63, %68 : vector<8x32xf32>
    %70 = arith.mulf %69, %69 : vector<8x32xf32>
    %cst_38 = arith.constant dense<0.000000e+00> : vector<8xf32>
    %71 = vector.multi_reduction <add>, %70, %cst_38 [1] : vector<8x32xf32> to vector<8xf32>
    %72 = vector.shape_cast %71 : vector<8xf32> to vector<8x1xf32>
    %cst_39 = arith.constant 3.200000e+01 : f32
    %73 = vector.broadcast %cst_39 : f32 to vector<8x1xf32>
    %74 = arith.divf %72, %73 : vector<8x1xf32>
    %75 = vector.broadcast %67 : vector<8x1xf32> to vector<8x32xf32>
    %76 = arith.subf %63, %75 : vector<8x32xf32>
    %cst_40 = arith.constant 9.99999974E-6 : f32
    %77 = vector.broadcast %cst_40 : f32 to vector<8x1xf32>
    %78 = arith.addf %74, %77 : vector<8x1xf32>
    %79 = math.rsqrt %78 : vector<8x1xf32>
    %80 = vector.broadcast %79 : vector<8x1xf32> to vector<8x32xf32>
    %81 = arith.mulf %76, %80 : vector<8x32xf32>
    %82 = arith.index_cast %arg1 : i32 to index
    %c0_41 = arith.constant 0 : index
    %c0_42 = arith.constant 0 : index
    %c0_43 = arith.constant 0 : index
    %83 = vector.load %arg10[%82, %c0_41, %c0_42, %c0_43] : memref<2x2x32x16xf32, #tpu.memory_space<vmem>>, vector<1x2x32x16xf32>
    %84 = vector.shape_cast %83 : vector<1x2x32x16xf32> to vector<2x32x16xf32>
    %85 = arith.index_cast %arg1 : i32 to index
    %c0_44 = arith.constant 0 : index
    %c0_45 = arith.constant 0 : index
    %c0_46 = arith.constant 0 : index
    %86 = vector.load %arg11[%85, %c0_44, %c0_45, %c0_46] : memref<2x2x64x16xf32, #tpu.memory_space<vmem>>, vector<1x2x64x16xf32>
    %87 = vector.shape_cast %86 : vector<1x2x64x16xf32> to vector<2x64x16xf32>
    %88 = arith.index_cast %arg1 : i32 to index
    %c0_47 = arith.constant 0 : index
    %c0_48 = arith.constant 0 : index
    %c0_49 = arith.constant 0 : index
    %89 = vector.load %arg12[%88, %c0_47, %c0_48, %c0_49] : memref<2x2x64x16xf32, #tpu.memory_space<vmem>>, vector<1x2x64x16xf32>
    %90 = vector.shape_cast %89 : vector<1x2x64x16xf32> to vector<2x64x16xf32>
    %91 = arith.index_cast %arg1 : i32 to index
    %c0_50 = arith.constant 0 : index
    %c0_51 = arith.constant 0 : index
    %c0_52 = arith.constant 0 : index
    %92 = vector.load %arg13[%91, %c0_50, %c0_51, %c0_52] : memref<2x2x16x32xf32, #tpu.memory_space<vmem>>, vector<1x2x16x32xf32>
    %93 = vector.shape_cast %92 : vector<1x2x16x32xf32> to vector<2x16x32xf32>
    %94 = vector.shape_cast %81 : vector<8x32xf32> to vector<1x8x32xf32>
    %95 = vector.shape_cast %94 : vector<1x8x32xf32> to vector<1x8x32xf32>
    %96 = vector.broadcast %95 : vector<1x8x32xf32> to vector<2x8x32xf32>
    %97 = vector.shape_cast %6 : vector<10x64xf32> to vector<1x10x64xf32>
    %98 = vector.shape_cast %97 : vector<1x10x64xf32> to vector<1x10x64xf32>
    %99 = vector.broadcast %98 : vector<1x10x64xf32> to vector<2x10x64xf32>
    %cst_53 = arith.constant dense<0.000000e+00> : vector<2x8x16xf32>
    %100 = tpu.matmul %96, %84, %cst_53 {dimension_numbers = #tpu.dot_dimension_numbers<[2], [1], [1], [2], [0, 0, 0, 1, 1, 2], [0], [0]>} : vector<2x8x32xf32>, vector<2x32x16xf32>, vector<2x8x16xf32> -> vector<2x8x16xf32>
    %cst_54 = arith.constant dense<0.000000e+00> : vector<2x10x16xf32>
    %101 = tpu.matmul %99, %87, %cst_54 {dimension_numbers = #tpu.dot_dimension_numbers<[2], [1], [1], [2], [0, 0, 0, 1, 1, 2], [0], [0]>} : vector<2x10x64xf32>, vector<2x64x16xf32>, vector<2x10x16xf32> -> vector<2x10x16xf32>
    %cst_55 = arith.constant dense<0.000000e+00> : vector<2x10x16xf32>
    %102 = tpu.matmul %99, %90, %cst_55 {dimension_numbers = #tpu.dot_dimension_numbers<[2], [1], [1], [2], [0, 0, 0, 1, 1, 2], [0], [0]>} : vector<2x10x64xf32>, vector<2x64x16xf32>, vector<2x10x16xf32> -> vector<2x10x16xf32>
    %cst_56 = arith.constant dense<0.000000e+00> : vector<2x8x10xf32>
    %103 = tpu.matmul %100, %101, %cst_56 {dimension_numbers = #tpu.dot_dimension_numbers<[2], [2], [1], [1], [0, 0, 0, 1, 1, 1], [0], [0]>} : vector<2x8x16xf32>, vector<2x10x16xf32>, vector<2x8x10xf32> -> vector<2x8x10xf32>
    %cst_57 = arith.constant 2.500000e-01 : f32
    %104 = vector.broadcast %cst_57 : f32 to vector<2x8x10xf32>
    %105 = arith.mulf %103, %104 : vector<2x8x10xf32>
    %106 = vector.shape_cast %21 : vector<8x10xi1> to vector<1x8x10xi1>
    %cst_58 = arith.constant -1.000000e+09 : f32
    %107 = vector.shape_cast %106 : vector<1x8x10xi1> to vector<1x8x10xi1>
    %108 = vector.broadcast %107 : vector<1x8x10xi1> to vector<2x8x10xi1>
    %109 = vector.broadcast %cst_58 : f32 to vector<2x8x10xf32>
    %110 = arith.select %108, %109, %105 : vector<2x8x10xi1>, vector<2x8x10xf32>
    %cst_59 = arith.constant dense<0xFF800000> : vector<2x8xf32>
    %111 = vector.multi_reduction <maximumf>, %110, %cst_59 [2] : vector<2x8x10xf32> to vector<2x8xf32>
    %112 = vector.shape_cast %111 : vector<2x8xf32> to vector<2x8x1xf32>
    %113 = vector.broadcast %112 : vector<2x8x1xf32> to vector<2x8x10xf32>
    %114 = arith.subf %110, %113 : vector<2x8x10xf32>
    %115 = math.exp %114 : vector<2x8x10xf32>
    %cst_60 = arith.constant dense<0.000000e+00> : vector<2x8xf32>
    %116 = vector.multi_reduction <add>, %115, %cst_60 [2] : vector<2x8x10xf32> to vector<2x8xf32>
    %117 = vector.shape_cast %116 : vector<2x8xf32> to vector<2x8x1xf32>
    %118 = vector.broadcast %117 : vector<2x8x1xf32> to vector<2x8x10xf32>
    %119 = arith.divf %115, %118 : vector<2x8x10xf32>
    %cst_61 = arith.constant dense<0.000000e+00> : vector<2x8x16xf32>
    %120 = tpu.matmul %119, %102, %cst_61 {dimension_numbers = #tpu.dot_dimension_numbers<[2], [1], [1], [2], [0, 0, 0, 1, 1, 2], [0], [0]>} : vector<2x8x10xf32>, vector<2x10x16xf32>, vector<2x8x16xf32> -> vector<2x8x16xf32>
    %cst_62 = arith.constant dense<0.000000e+00> : vector<2x8x32xf32>
    %121 = tpu.matmul %120, %93, %cst_62 {dimension_numbers = #tpu.dot_dimension_numbers<[2], [1], [1], [2], [0, 0, 0, 1, 1, 2], [0], [0]>} : vector<2x8x16xf32>, vector<2x16x32xf32>, vector<2x8x32xf32> -> vector<2x8x32xf32>
    %cst_63 = arith.constant dense<0.000000e+00> : vector<8x32xf32>
    %122 = vector.multi_reduction <add>, %121, %cst_63 [0] : vector<2x8x32xf32> to vector<8x32xf32>
    %123 = arith.addf %122, %81 : vector<8x32xf32>
    %cst_64 = arith.constant dense<0.000000e+00> : vector<8xf32>
    %124 = vector.multi_reduction <add>, %123, %cst_64 [1] : vector<8x32xf32> to vector<8xf32>
    %125 = vector.shape_cast %124 : vector<8xf32> to vector<8x1xf32>
    %cst_65 = arith.constant 3.200000e+01 : f32
    %126 = vector.broadcast %cst_65 : f32 to vector<8x1xf32>
    %127 = arith.divf %125, %126 : vector<8x1xf32>
    %128 = vector.broadcast %127 : vector<8x1xf32> to vector<8x32xf32>
    %129 = arith.subf %123, %128 : vector<8x32xf32>
    %130 = arith.mulf %129, %129 : vector<8x32xf32>
    %cst_66 = arith.constant dense<0.000000e+00> : vector<8xf32>
    %131 = vector.multi_reduction <add>, %130, %cst_66 [1] : vector<8x32xf32> to vector<8xf32>
    %132 = vector.shape_cast %131 : vector<8xf32> to vector<8x1xf32>
    %cst_67 = arith.constant 3.200000e+01 : f32
    %133 = vector.broadcast %cst_67 : f32 to vector<8x1xf32>
    %134 = arith.divf %132, %133 : vector<8x1xf32>
    %135 = vector.broadcast %127 : vector<8x1xf32> to vector<8x32xf32>
    %136 = arith.subf %123, %135 : vector<8x32xf32>
    %cst_68 = arith.constant 9.99999974E-6 : f32
    %137 = vector.broadcast %cst_68 : f32 to vector<8x1xf32>
    %138 = arith.addf %134, %137 : vector<8x1xf32>
    %139 = math.rsqrt %138 : vector<8x1xf32>
    %140 = vector.broadcast %139 : vector<8x1xf32> to vector<8x32xf32>
    %141 = arith.mulf %136, %140 : vector<8x32xf32>
    %142 = arith.index_cast %arg1 : i32 to index
    %c0_69 = arith.constant 0 : index
    %c0_70 = arith.constant 0 : index
    %143 = vector.load %arg14[%142, %c0_69, %c0_70] : memref<2x32x64xf32, #tpu.memory_space<vmem>>, vector<1x32x64xf32>
    %144 = vector.shape_cast %143 : vector<1x32x64xf32> to vector<32x64xf32>
    %cst_71 = arith.constant dense<0.000000e+00> : vector<8x64xf32>
    %145 = tpu.matmul %141, %144, %cst_71 {dimension_numbers = #tpu.dot_dimension_numbers<[1], [0], [0], [1], [0, 0, 1, 1], [], []>} : vector<8x32xf32>, vector<32x64xf32>, vector<8x64xf32> -> vector<8x64xf32>
    %cst_72 = arith.constant 0.000000e+00 : f32
    %146 = vector.broadcast %cst_72 : f32 to vector<8x64xf32>
    %147 = arith.maximumf %145, %146 : vector<8x64xf32>
    %148 = arith.index_cast %arg1 : i32 to index
    %c0_73 = arith.constant 0 : index
    %c0_74 = arith.constant 0 : index
    %149 = vector.load %arg15[%148, %c0_73, %c0_74] : memref<2x64x32xf32, #tpu.memory_space<vmem>>, vector<1x64x32xf32>
    %150 = vector.shape_cast %149 : vector<1x64x32xf32> to vector<64x32xf32>
    %cst_75 = arith.constant dense<0.000000e+00> : vector<8x32xf32>
    %151 = tpu.matmul %147, %150, %cst_75 {dimension_numbers = #tpu.dot_dimension_numbers<[1], [0], [0], [1], [0, 0, 1, 1], [], []>} : vector<8x64xf32>, vector<64x32xf32>, vector<8x32xf32> -> vector<8x32xf32>
    %152 = arith.addf %151, %141 : vector<8x32xf32>
    %cst_76 = arith.constant dense<0.000000e+00> : vector<8xf32>
    %153 = vector.multi_reduction <add>, %152, %cst_76 [1] : vector<8x32xf32> to vector<8xf32>
    %154 = vector.shape_cast %153 : vector<8xf32> to vector<8x1xf32>
    %cst_77 = arith.constant 3.200000e+01 : f32
    %155 = vector.broadcast %cst_77 : f32 to vector<8x1xf32>
    %156 = arith.divf %154, %155 : vector<8x1xf32>
    %157 = vector.broadcast %156 : vector<8x1xf32> to vector<8x32xf32>
    %158 = arith.subf %152, %157 : vector<8x32xf32>
    %159 = arith.mulf %158, %158 : vector<8x32xf32>
    %cst_78 = arith.constant dense<0.000000e+00> : vector<8xf32>
    %160 = vector.multi_reduction <add>, %159, %cst_78 [1] : vector<8x32xf32> to vector<8xf32>
    %161 = vector.shape_cast %160 : vector<8xf32> to vector<8x1xf32>
    %cst_79 = arith.constant 3.200000e+01 : f32
    %162 = vector.broadcast %cst_79 : f32 to vector<8x1xf32>
    %163 = arith.divf %161, %162 : vector<8x1xf32>
    %164 = vector.broadcast %156 : vector<8x1xf32> to vector<8x32xf32>
    %165 = arith.subf %152, %164 : vector<8x32xf32>
    %cst_80 = arith.constant 9.99999974E-6 : f32
    %166 = vector.broadcast %cst_80 : f32 to vector<8x1xf32>
    %167 = arith.addf %163, %166 : vector<8x1xf32>
    %168 = math.rsqrt %167 : vector<8x1xf32>
    %169 = vector.broadcast %168 : vector<8x1xf32> to vector<8x32xf32>
    %170 = arith.mulf %165, %169 : vector<8x32xf32>
    %c0_81 = arith.constant 0 : index
    %c0_82 = arith.constant 0 : index
    %c0_83 = arith.constant 0 : index
    %171 = vector.load %arg16[%c0_81, %c0_82, %c0_83] : memref<1x8x32xf32, #tpu.memory_space<vmem>>, vector<1x8x32xf32>
    %172 = vector.shape_cast %171 : vector<1x8x32xf32> to vector<8x32xf32>
    %173 = vector.shape_cast %170 : vector<8x32xf32> to vector<1x8x32xf32>
    tpu.vector_store %arg16[%c0_81, %c0_82, %c0_83], %173 {strides = array<i32>} : memref<1x8x32xf32, #tpu.memory_space<vmem>>, vector<1x8x32xf32>,
    %c0_84 = arith.constant 0 : index
    %c0_85 = arith.constant 0 : index
    %c0_86 = arith.constant 0 : index
    %c0_87 = arith.constant 0 : index
    %174 = vector.load %arg17[%c0_84, %c0_85, %c0_86, %c0_87] : memref<1x2x8x8xf32, #tpu.memory_space<vmem>>, vector<1x2x8x8xf32>
    %175 = vector.shape_cast %174 : vector<1x2x8x8xf32> to vector<2x8x8xf32>
    %176 = vector.shape_cast %59 : vector<2x8x8xf32> to vector<1x2x8x8xf32>
    tpu.vector_store %arg17[%c0_84, %c0_85, %c0_86, %c0_87], %176 {strides = array<i32>} : memref<1x2x8x8xf32, #tpu.memory_space<vmem>>, vector<1x2x8x8xf32>,
    %c0_88 = arith.constant 0 : index
    %c0_89 = arith.constant 0 : index
    %c0_90 = arith.constant 0 : index
    %c0_91 = arith.constant 0 : index
    %177 = vector.load %arg18[%c0_88, %c0_89, %c0_90, %c0_91] : memref<1x2x8x10xf32, #tpu.memory_space<vmem>>, vector<1x2x8x10xf32>
    %178 = vector.shape_cast %177 : vector<1x2x8x10xf32> to vector<2x8x10xf32>
    %179 = vector.shape_cast %119 : vector<2x8x10xf32> to vector<1x2x8x10xf32>
    tpu.vector_store %arg18[%c0_88, %c0_89, %c0_90, %c0_91], %179 {strides = array<i32>} : memref<1x2x8x10xf32, #tpu.memory_space<vmem>>, vector<1x2x8x10xf32>,
    return
  }
  func.func @transform_0(%arg0: i32, %arg1: i32) -> (i32, i32, i32) {
    %c0_i32 = arith.constant 0 : i32
    %c0_i32_0 = arith.constant 0 : i32
    %c0_i32_1 = arith.constant 0 : i32
    return %arg0, %c0_i32, %c0_i32_0 : i32, i32, i32
  }
  func.func @transform_1(%arg0: i32, %arg1: i32) -> (i32, i32, i32) {
    %c0_i32 = arith.constant 0 : i32
    %c0_i32_0 = arith.constant 0 : i32
    %c0_i32_1 = arith.constant 0 : i32
    return %arg0, %c0_i32, %c0_i32_0 : i32, i32, i32
  }
  func.func @transform_2(%arg0: i32, %arg1: i32) -> (i32, i32, i32) {
    %c0_i32 = arith.constant 0 : i32
    %c0_i32_0 = arith.constant 0 : i32
    %c0_i32_1 = arith.constant 0 : i32
    return %arg0, %c0_i32, %c0_i32_0 : i32, i32, i32
  }
  func.func @transform_3(%arg0: i32, %arg1: i32) -> (i32, i32, i32) {
    %c0_i32 = arith.constant 0 : i32
    %c0_i32_0 = arith.constant 0 : i32
    %c0_i32_1 = arith.constant 0 : i32
    return %arg0, %c0_i32, %c0_i32_0 : i32, i32, i32
  }
  func.func @transform_4(%arg0: i32, %arg1: i32) -> (i32, i32, i32, i32) {
    %c0_i32 = arith.constant 0 : i32
    %c0_i32_0 = arith.constant 0 : i32
    %c0_i32_1 = arith.constant 0 : i32
    %c0_i32_2 = arith.constant 0 : i32
    %c0_i32_3 = arith.constant 0 : i32
    return %c0_i32, %c0_i32_0, %c0_i32_1, %c0_i32_2 : i32, i32, i32, i32
  }
  func.func @transform_5(%arg0: i32, %arg1: i32) -> (i32, i32, i32, i32) {
    %c0_i32 = arith.constant 0 : i32
    %c0_i32_0 = arith.constant 0 : i32
    %c0_i32_1 = arith.constant 0 : i32
    %c0_i32_2 = arith.constant 0 : i32
    %c0_i32_3 = arith.constant 0 : i32
    return %c0_i32, %c0_i32_0, %c0_i32_1, %c0_i32_2 : i32, i32, i32, i32
  }
  func.func @transform_6(%arg0: i32, %arg1: i32) -> (i32, i32, i32, i32) {
    %c0_i32 = arith.constant 0 : i32
    %c0_i32_0 = arith.constant 0 : i32
    %c0_i32_1 = arith.constant 0 : i32
    %c0_i32_2 = arith.constant 0 : i32
    %c0_i32_3 = arith.constant 0 : i32
    return %c0_i32, %c0_i32_0, %c0_i32_1, %c0_i32_2 : i32, i32, i32, i32
  }
  func.func @transform_7(%arg0: i32, %arg1: i32) -> (i32, i32, i32, i32) {
    %c0_i32 = arith.constant 0 : i32
    %c0_i32_0 = arith.constant 0 : i32
    %c0_i32_1 = arith.constant 0 : i32
    %c0_i32_2 = arith.constant 0 : i32
    %c0_i32_3 = arith.constant 0 : i32
    return %c0_i32, %c0_i32_0, %c0_i32_1, %c0_i32_2 : i32, i32, i32, i32
  }
  func.func @transform_8(%arg0: i32, %arg1: i32) -> (i32, i32, i32, i32) {
    %c0_i32 = arith.constant 0 : i32
    %c0_i32_0 = arith.constant 0 : i32
    %c0_i32_1 = arith.constant 0 : i32
    %c0_i32_2 = arith.constant 0 : i32
    %c0_i32_3 = arith.constant 0 : i32
    return %c0_i32, %c0_i32_0, %c0_i32_1, %c0_i32_2 : i32, i32, i32, i32
  }
  func.func @transform_9(%arg0: i32, %arg1: i32) -> (i32, i32, i32, i32) {
    %c0_i32 = arith.constant 0 : i32
    %c0_i32_0 = arith.constant 0 : i32
    %c0_i32_1 = arith.constant 0 : i32
    %c0_i32_2 = arith.constant 0 : i32
    %c0_i32_3 = arith.constant 0 : i32
    return %c0_i32, %c0_i32_0, %c0_i32_1, %c0_i32_2 : i32, i32, i32, i32
  }
  func.func @transform_10(%arg0: i32, %arg1: i32) -> (i32, i32, i32, i32) {
    %c0_i32 = arith.constant 0 : i32
    %c0_i32_0 = arith.constant 0 : i32
    %c0_i32_1 = arith.constant 0 : i32
    %c0_i32_2 = arith.constant 0 : i32
    %c0_i32_3 = arith.constant 0 : i32
    return %c0_i32, %c0_i32_0, %c0_i32_1, %c0_i32_2 : i32, i32, i32, i32
  }
  func.func @transform_11(%arg0: i32, %arg1: i32) -> (i32, i32, i32, i32) {
    %c0_i32 = arith.constant 0 : i32
    %c0_i32_0 = arith.constant 0 : i32
    %c0_i32_1 = arith.constant 0 : i32
    %c0_i32_2 = arith.constant 0 : i32
    %c0_i32_3 = arith.constant 0 : i32
    return %c0_i32, %c0_i32_0, %c0_i32_1, %c0_i32_2 : i32, i32, i32, i32
  }
  func.func @transform_12(%arg0: i32, %arg1: i32) -> (i32, i32, i32) {
    %c0_i32 = arith.constant 0 : i32
    %c0_i32_0 = arith.constant 0 : i32
    %c0_i32_1 = arith.constant 0 : i32
    %c0_i32_2 = arith.constant 0 : i32
    return %c0_i32, %c0_i32_0, %c0_i32_1 : i32, i32, i32
  }
  func.func @transform_13(%arg0: i32, %arg1: i32) -> (i32, i32, i32) {
    %c0_i32 = arith.constant 0 : i32
    %c0_i32_0 = arith.constant 0 : i32
    %c0_i32_1 = arith.constant 0 : i32
    %c0_i32_2 = arith.constant 0 : i32
    return %c0_i32, %c0_i32_0, %c0_i32_1 : i32, i32, i32
  }
  func.func @transform_14(%arg0: i32, %arg1: i32) -> (i32, i32, i32) {
    %c0_i32 = arith.constant 0 : i32
    %c0_i32_0 = arith.constant 0 : i32
    %c0_i32_1 = arith.constant 0 : i32
    return %arg0, %c0_i32, %c0_i32_0 : i32, i32, i32
  }
  func.func @transform_15(%arg0: i32, %arg1: i32) -> (i32, i32, i32, i32) {
    %c2_i32 = arith.constant 2 : i32
    %0 = arith.muli %arg0, %c2_i32 : i32
    %1 = arith.addi %0, %arg1 : i32
    %c0_i32 = arith.constant 0 : i32
    %c0_i32_0 = arith.constant 0 : i32
    %c0_i32_1 = arith.constant 0 : i32
    %c0_i32_2 = arith.constant 0 : i32
    return %1, %c0_i32, %c0_i32_0, %c0_i32_1 : i32, i32, i32, i32
  }
  func.func @transform_16(%arg0: i32, %arg1: i32) -> (i32, i32, i32, i32) {
    %c2_i32 = arith.constant 2 : i32
    %0 = arith.muli %arg0, %c2_i32 : i32
    %1 = arith.addi %0, %arg1 : i32
    %c0_i32 = arith.constant 0 : i32
    %c0_i32_0 = arith.constant 0 : i32
    %c0_i32_1 = arith.constant 0 : i32
    %c0_i32_2 = arith.constant 0 : i32
    return %1, %c0_i32, %c0_i32_0, %c0_i32_1 : i32, i32, i32, i32
  }
}

</mosaic_0001>

<bundles_post_ra>
// kernel: pasts_decoder_forward.1
= control target key start
LH: loop header
LB: loop body
LE: loop exit
PB: predicated region body
PF: predicated region fallthrough
CT: control target
= control target key end

     0   :  { %s4344_s0 = inlined_call_operand.vmem [shape: f32[2,8,32], index: 0, kind: input, shape index: {}]   ;;  %s4345_s1 = inlined_call_operand.vmem [shape: f32[2,10,64], index: 1, kind: input, shape index: {}]   ;;  %s4346_s2 = inlined_call_operand.vmem [shape: f32[2,1,8], index: 2, kind: input, shape index: {}]   ;;  %s4347_s3 = inlined_call_operand.vmem [shape: f32[2,1,10], index: 3, kind: input, shape index: {}]   ;;  %s4348_s4 = inlined_call_operand.vmem [shape: f32[2,2,32,16], index: 4, kind: input, shape index: {}]   ;;  %s4349_s5 = inlined_call_operand.vmem [shape: f32[2,2,32,16], index: 5, kind: input, shape index: {}]   ;;  %s4350_s6 = inlined_call_operand.vmem [shape: f32[2,2,32,16], index: 6, kind: input, shape index: {}]   ;;  %s4351_s7 = inlined_call_operand.vmem [shape: f32[2,2,16,32], index: 7, kind: input, shape index: {}]   ;;  %s4352_s8 = inlined_call_operand.vmem [shape: f32[2,2,32,16], index: 8, kind: input, shape index: {}]   ;;  %s4353_s9 = inlined_call_operand.vmem [shape: f32[2,2,64,16], index: 9, kind: input, shape index: {}]   ;;  %s4354_s10 = inlined_call_operand.vmem [shape: f32[2,2,64,16], index: 10, kind: input, shape index: {}]   ;;  %s4355_s11 = inlined_call_operand.vmem [shape: f32[2,2,16,32], index: 11, kind: input, shape index: {}]   ;;  %s4356_s12 = inlined_call_operand.vmem [shape: f32[2,32,64], index: 12, kind: input, shape index: {}]   ;;  %s4357_s13 = inlined_call_operand.vmem [shape: f32[2,64,32], index: 13, kind: input, shape index: {}]   ;;  %s4358_s14 = inlined_call_operand.hbm [shape: f32[2,8,32], index: 14, kind: output, shape index: {0}]   ;;  %s4359_s15 = inlined_call_operand.vmem [shape: f32[4,2,8,8], index: 15, kind: output, shape index: {1}]   ;;  %s4360_s16 = inlined_call_operand.vmem [shape: f32[4,2,8,10], index: 16, kind: output, shape index: {2}]  }
   0x1   :  { %4375 = sst [smem:[#allocation17_spill]] %s4344_s0 }
   0x2   :  { %4376 = sst [smem:[#allocation18_spill]] %s4352_s8 }
   0x3   :  { %4377 = sst [smem:[#allocation19_spill]] %s4353_s9 }
   0x4   :  { %4378 = sst [smem:[#allocation20_spill]] %s4354_s10 }
   0x5   :  { %4379 = sst [smem:[#allocation21_spill]] %s4355_s11 }
   0x6   :  { %4380 = sst [smem:[#allocation22_spill]] %s4356_s12 }
   0x7   :  { %4381 = sst [smem:[#allocation23_spill]] %s4357_s13 }
   0x8   :  { %4382 = sst [smem:[#allocation24_spill]] %s4358_s14 }
   0x9   :  { %22 = vsyncpa [#allocation3], 0 }
   0xa   :  { %24 = vsyncpa [#allocation3 + $0x1], 0  ;;  %s3902_s21 = smov 0   ;;  %s3904_s22 = smov 0  }
   0xb   :  { %s3906_s23 = smov 0   ;;  %s3908_s24 = smov 0  }
   0xc   :  { %s3910_s25 = smov 0   ;;  %s3912_s26 = smov 0  }
   0xd   :  { %s3914_s27 = smov 0   ;;  %s3916_s28 = smov 0  }
   0xe LB: > { %4383 = sst [smem:[#allocation5_spill]] %s3781_s21  ;;  %s2995_s29 = sadd.s32 4294967295, %s3809_s28   ;;  %s3809_s28 = sphi %s3916_s28, %s30_s28   ;;  %s3805_s27 = sphi %s3914_s27, %s4419_s27   ;;  %s3801_s26 = sphi %s3912_s26, %s4418_s26   ;;  %s3797_s25 = sphi %s3910_s25, %s4417_s25   ;;  %s3793_s24 = sphi %s3908_s24, %s4416_s24   ;;  %s3789_s23 = sphi %s3906_s23, %s4415_s23   ;;  %s3785_s22 = sphi %s3904_s22, %s4414_s22   ;;  %s3781_s21 = sphi %s3902_s21, %s4413_s21  }
   0xf   : > { %4384 = sst [smem:[#allocation6_spill]] %s3785_s22  ;;  %s2996_s30 = sadd.s32 4294967294, %s3809_s28  }
  0x10   : > { %4385 = sst [smem:[#allocation7_spill]] %s3789_s23  ;;  %s39_s0 = sadd.s32 1, %s3801_s26 }
  0x11   : > { %4386 = sst [smem:[#allocation8_spill]] %s3797_s25  ;;  %p40_p0 = scmp.ge.s32.totalorder %s39_s0, 2 }
  0x12   : > { %4387 = sst [smem:[#allocation9_spill]] %s3801_s26  ;;  %s42_s17 = sadd.s32 1, %s3805_s27 }
  0x13   : > { %4388 = sst [smem:[#allocation10_spill]] %s3805_s27  ;;  %p373_p1 = scmp.ne.s32.totalorder %s3789_s23, %s3785_s22 }
  0x14   : > { %4389 = sst [smem:[#allocation11_spill]] %s3809_s28  ;;  %p374_p2 = scmp.eq.s32.totalorder %s2995_s29, 3 }
  0x15   : > { %s4421_s0 = smov (%p40_p0, %s39_s0), 0  ;;  %s4423_s17 = smov (!%p40_p0, %s42_s17), %s3805_s27 }
  0x16   : > { %4390 = sst [smem:[#allocation12_spill]] %s4421_s0  ;;  %p3951_p3 = por %p374_p2, %p373_p1 }
  0x17   : > { %p379_p4 = scmp.ne.s32.totalorder %s3785_s22, %s3781_s21  ;;  %p44_p5 = scmp.ge.s32.totalorder %s4423_s17, 2 }
  0x18   : > { %s4391_s18 = scalar_select %p3951_p3, 1, 0 }
  0x19   : > { %p380_p6 = scmp.eq.s32.totalorder %s2996_s30, 3  ;;  %p3003_p7 = scmp.ge.s32.totalorder %s3809_s28, 1 }
  0x1a   : > { %4392 = sst [smem:[#allocation13_spill]] %s4391_s18  ;;  %p515_p8 = scmp.lt.s32.totalorder %s3809_s28, 5 }
  0x1b   : > { %s4425_s17 = smov (%p44_p5, %s4423_s17), 0  ;;  %p3961_p9 = por %p380_p6, %p379_p4 }
  0x1c   : > { %4393 = sst [smem:[#allocation14_spill]] %s4425_s17  ;;  %p516_p10 = pnand %p3003_p7, %p515_p8 }
  0x1d   : > { %s4394_s19 = scalar_select %p3961_p9, 1, 0 }
  0x1e   : > { %s360_s20 = ssub.s32 %s3805_s27, %s4425_s17  ;;  %s363_s29 = sadd.s32 1, %s3789_s23 }
  0x1f   : > { %4395 = sst [smem:[#allocation15_spill]] %s4394_s19  ;;  %p361_p11 = scmp.eq.s32.totalorder %s360_s20, 0 }
  0x20   : > { %519 = sbr.rel (%p516_p10) target bundleno = 3810 (0xee2), region = 76  ;;  %s4373_s30 = sand.u32 (!%p516_p10), 1, %s3785_s22  }
  0x21   : > { %s3969_s0 = scalar_select %p361_p11, %s3789_s23, %s363_s29  }
  0x22   : > { %p589_p12 = scmp.lt.s32.totalorder (!%p516_p10), %s3797_s25, 1  ;;  %s3004_s26 = sshll.u32 (!%p516_p10), %s4373_s30, 3 }
  0x23   : > { %4396 = sst [smem:[#allocation16_spill]] %s3969_s0  ;;  %s3008_s21 = sshll.u32 (!%p516_p10), %s3797_s25, 1 }
  0x24   : > { %s605_s28 = sadd.s32 (!%p516_p10), %s3793_s24, %s3008_s21  ;;  %s4397_s0 = sld [smem:[#allocation17_spill]] (!%p516_p10) }
  0x25   : > { %p606_p13 = scmp.lt.s32.totalorder (!%p516_p10), %s605_s28, 3  ;;  %s4008_s18 = scalar_lea.vmem (!%p516_p10), [#allocation2], %s3004_s26 }
  0x26   : > { %p3014_p0 = scmp.ne.s32.totalorder (!%p516_p10), %s3793_s24, 0 }
  0x27   : > { %s3978_s19 = scalar_select %p589_p12, %s3797_s25, 1 }
  0x28   : > { %s4427_s28 = smov (!%p606_p13, %s605_s28), 3  ;;  %625 = sbr.rel (%p3014_p0) target bundleno = 47 (0x2f), region = 80 }
  0x29   : > { %s3005_s20 = sshll.u32 %s3978_s19, 3  ;;  %s3060_s29 = sshll.u32 %s3978_s19, 4  ;;  %vm627_vm0 = vcmask (!%p3014_p0), 261120  }
  0x2a   : > { %s592_s23 = scalar_lea.vmem %s4397_s0, %s3005_s20  ;;  %s3988_s22 = scalar_lea.vmem %s4345_s1, %s3060_s29 }
  0x2b   : > { %s600_s25 = scalar_lea.vmem %s4346_s2, %s3978_s19  ;;  %s603_s11 = scalar_lea.vmem %s4347_s3, %s3978_s19  ;;  %v626_v0 = vld [vmem:[%s592_s23] sm:$0xff] (!%p3014_p0) }
  0x2c   : > { %s3061_s10 = sshll.u32 %s4427_s28, 4  ;;  %628 = vst.msk [vmem:[%s4008_s18] sm:$0xff] (!%p3014_p0), %vm627_vm0, %v626_v0 }
  0x2d   : > { %s4001_s27 = scalar_lea.vmem %s4359_s15, %s3061_s10  ;;  %s4006_s14 = scalar_lea.vmem %s4360_s16, %s3061_s10 }
  0x2f PF: > { %s4013_s12 = sshll.u32 %s3793_s24, 6  ;;  %v3811_v1 = vmov 0.0|0.0   ;;  %vm3812_vm1 = vmmov 0   ;;  %v3813_v5 = vmov 0.0   ;;  %vm682_vm2 = vcmask 261120   ;;  %s3031_s23 = sshll.u32 %s3793_s24, 7 }
  0x30   : > { %3459 = vmatprep.subr.bf16.mxu0 %v3811_v1  ;;  %s649_s10 = scalar_lea.vmem %s4348_s4, %s4013_s12  ;;  %3465 = vmatprep.subr.bf16.mxu1 %v3811_v1  ;;  %s658_s26 = scalar_lea.vmem %s4349_s5, %s4013_s12  ;;  %vm1106_vm3 = vcmask 130048   ;;  %v632_v50 = vlaneseq  ;;  %v636_v51 = vld [vmem:[%s600_s25] sm:$0x1]  ;;  %v3814_v54 = vmov 0   ;;  %vm1265_vm8 = vcmask 64512  }
  0x31   : > { %v650_v2 = vld [vmem:[%s649_s10] sm:$0xff]  ;;  %v651_v3 = vld [vmem:[%s649_s10 + $0x8] sm:$0xff]  ;;  %3197 = vmatprep.mubr.msk.f32.mxu0 %vm3812_vm1, %v3813_v5  ;;  %3208 = vmatprep.mubr.msk.f32.mxu1 %vm3812_vm1, %v3813_v5  ;;  %v652_v8 = vld [vmem:[%s649_s10 + $0x10] sm:$0xff]  ;;  %s4040_s20 = scalar_lea.vmem %s4350_s6, %s4013_s12  ;;  %vm637_vm4 = vcmp.gt.f32.partialorder %v636_v51, 0.0  ;;  %s4111_s25 = sshll.u32 %s3793_s24, 5  ;;  %vm1790_vm9 = vcmask 523264  }
  0x32   : > { %v654_v4 = vld [vmem:[%s649_s10 + $0x20] sm:$0xff]  ;;  %v3460_v6 = vpack.c.bf16 %v651_v3, %v650_v2  ;;  %v655_v7 = vld [vmem:[%s649_s10 + $0x28] sm:$0xff]  ;;  %v653_v9 = vld [vmem:[%s649_s10 + $0x18] sm:$0xff]  ;;  %v4098_v52 = vshrl.u32 %v632_v50, 7  ;;  %v639_v55 = vsel %vm637_vm4, 1, %v3814_v54  ;;  %v635_v56 = vand.u32 127, %v632_v50  ;;  %s677_s8 = scalar_lea.vmem %s4351_s7, %s4111_s25 }
  0x33   : > { %v3466_v10 = vpack.c.bf16 %v655_v7, %v654_v4  ;;  %v656_v11 = vld [vmem:[%s649_s10 + $0x30] sm:$0xff]  ;;  %v657_v12 = vld [vmem:[%s649_s10 + $0x38] sm:$0xff]  ;;  %v3463_v13 = vpack.c.bf16 %v653_v9, %v652_v8  ;;  %v659_v15 = vld [vmem:[%s658_s26] sm:$0xff]  ;;  %s4398_s10 = sld [smem:[#allocation18_spill]]  ;;  %s4399_s30 = sld [smem:[#allocation19_spill]]  ;;  %vm2291_vm11 = vcmask 1041408  }
  0x34   : > { %3461 = vmatpush3.bf16.msra.mxu0 %v3460_v6  ;;  %v3469_v14 = vpack.c.bf16 %v657_v12, %v656_v11  ;;  %v660_v16 = vld [vmem:[%s658_s26 + $0x8] sm:$0xff]  ;;  %v663_v17 = vld [vmem:[%s658_s26 + $0x20] sm:$0xff]  ;;  %v661_v22 = vld [vmem:[%s658_s26 + $0x10] sm:$0xff]  ;;  %v642_v53 = vsub.s32 0, %v4098_v52  ;;  %vm638_vm5 = vcmp.gt.s32.totalorder %v635_v56, %v4098_v52  ;;  %s4400_s0 = sld [smem:[#allocation20_spill]]  ;;  %vm3815_vm12 = vmmov 1  }
  0x35   : > { %3462 = vmatprep.subr.bf16.mxu0 %v3811_v1  ;;  %3467 = vmatpush3.bf16.msra.mxu1 %v3466_v10  ;;  %v664_v18 = vld [vmem:[%s658_s26 + $0x28] sm:$0xff]  ;;  %v3472_v20 = vpack.c.bf16 %v660_v16, %v659_v15  ;;  %v662_v23 = vld [vmem:[%s658_s26 + $0x18] sm:$0xff]  ;;  %v665_v24 = vld [vmem:[%s658_s26 + $0x30] sm:$0xff]  ;;  %vm2265_vm0 = vcmask 80896   ;;  %s4403_s28 = sld [smem:[#allocation23_spill]]  ;;  %s2811_s21 = sshll.u32 %s4008_s18, 4  ;;  %s4289_s21 = int_to_ptr.vmem [resolvable:$true] %s2811_s21 }
  0x36   : > { %3468 = vmatprep.subr.bf16.mxu1 %v3811_v1  ;;  %v4032_v19 = vld [vmem:[%s4008_s18] sm:$0xff]  ;;  %v3478_v21 = vpack.c.bf16 %v664_v18, %v663_v17  ;;  %v666_v25 = vld [vmem:[%s658_s26 + $0x38] sm:$0xff]  ;;  %v3475_v26 = vpack.c.bf16 %v662_v23, %v661_v22  ;;  %v670_v31 = vld [vmem:[%s4040_s20 + $0x10] sm:$0xff]  ;;  %v643_v57 = vrot.slane %v639_v55, %v642_v53 }
  0x37   : > { %v3481_v27 = vpack.c.bf16 %v666_v25, %v665_v24  ;;  %v668_v28 = vld [vmem:[%s4040_s20] sm:$0xff]  ;;  %v669_v29 = vld [vmem:[%s4040_s20 + $0x8] sm:$0xff]  ;;  %v671_v32 = vld [vmem:[%s4040_s20 + $0x18] sm:$0xff] }
  0x38   : > { %3464 = vmatpush3.bf16.msra.mxu0 %v3463_v13  ;;  %v3484_v30 = vpack.c.bf16 %v669_v29, %v668_v28  ;;  %v3487_v33 = vpack.c.bf16 %v671_v32, %v670_v31  ;;  %v672_v44 = vld [vmem:[%s4040_s20 + $0x20] sm:$0xff]  ;;  %v673_v45 = vld [vmem:[%s4040_s20 + $0x28] sm:$0xff]  ;;  %v674_v46 = vld [vmem:[%s4040_s20 + $0x30] sm:$0xff]  ;;  %vm644_vm6 = vcmp.eq.s32.totalorder %v643_v57, 1 }
  0x39   : > { %3470 = vmatpush3.bf16.msra.mxu1 %v3469_v14  ;;  %3471 = vmatprep.subr.bf16.mxu0 %v3811_v1  ;;  %v3490_v47 = vpack.c.bf16 %v673_v45, %v672_v44  ;;  %v675_v48 = vld [vmem:[%s4040_s20 + $0x38] sm:$0xff]  ;;  %vm645_vm7 = vmor %vm644_vm6, %vm638_vm5  ;;  %v679_v22 = vld [vmem:[%s677_s8 + $0x8] sm:$0xff]  ;;  %s1598_s13 = scalar_lea.vmem %s4398_s10, %s4013_s12  ;;  %s4150_s20 = scalar_lea.vmem %s4399_s30, %s3031_s23 }
  0x3a   : > { %3477 = vmatprep.subr.bf16.mxu1 %v3811_v1  ;;  %v3493_v49 = vpack.c.bf16 %v675_v48, %v674_v46  ;;  %v680_v28 = vld [vmem:[%s677_s8 + $0x10] sm:$0xff]  ;;  %v681_v29 = vld [vmem:[%s677_s8 + $0x18] sm:$0xff]  ;;  %v1600_v50 = vld [vmem:[%s1598_s13 + $0x8] sm:$0xff]  ;;  %s4184_s17 = scalar_lea.vmem %s4400_s0, %s3031_s23  ;;  %s4402_s10 = sld [smem:[#allocation22_spill]] }
  0x3b   : > { %3198 = vmatmul.mubr.msk.f32.vlgmr.msra.gmra.mrb[0].mxu0 %vm682_vm2, %v4032_v19  ;;  %v1603_v51 = vld [vmem:[%s1598_s13 + $0x20] sm:$0xff]  ;;  %v1604_v55 = vld [vmem:[%s1598_s13 + $0x28] sm:$0xff]  ;;  %v1601_v56 = vld [vmem:[%s1598_s13 + $0x10] sm:$0xff]  ;;  %s2683_s30 = scalar_lea.vmem %s4403_s28, %s4013_s12  ;;  %s4404_s12 = sld [smem:[#allocation8_spill]] }
  0x3c   : > { %3473 = vmatpush3.bf16.msra.mxu0 %v3472_v20  ;;  %3209 = vmatmul.mubr.msk.f32.vlgmr.msra.gmra.mrb[0].mxu1 %vm682_vm2, %v4032_v19  ;;  %v1602_v57 = vld [vmem:[%s1598_s13 + $0x18] sm:$0xff]  ;;  %vm3579_vm10 = vmpackc.low %vm1106_vm3, %vm1106_vm3 }
  0x3d   : > { %3474 = vmatprep.subr.bf16.mxu0 %v3811_v1  ;;  %3479 = vmatpush3.bf16.msra.mxu1 %v3478_v21  ;;  %v678_v21 = vld [vmem:[%s677_s8] sm:$0xff]  ;;  %vm3587_vm13 = vmpackc.low %vm2291_vm11, %vm3815_vm12  ;;  %s4401_s8 = sld [smem:[#allocation21_spill]] }
  0x3e   : > { %3219 = vmatprep.mubr.msk.f32.mxu0 %vm3812_vm1, %v3813_v5  ;;  %3480 = vmatprep.subr.bf16.mxu1 %v3811_v1  ;;  %v3496_v24 = vpack.c.bf16 %v679_v22, %v678_v21  ;;  %v1621_v21 = vld [vmem:[%s4150_s20 + $0x60] sm:$0xff]  ;;  %v1622_v22 = vld [vmem:[%s4150_s20 + $0x68] sm:$0xff] }
  0x3f   : > { %3230 = vmatprep.mubr.msk.f32.mxu1 %vm3812_vm1, %v3813_v5 }
  0x40   : > { %3476 = vmatpush3.bf16.msra.mxu0 %v3475_v26 }
  0x41   : > { %3482 = vmatpush3.bf16.msra.mxu1 %v3481_v27  ;;  %3483 = vmatprep.subr.bf16.mxu0 %v3811_v1  ;;  %s3057_s29 = sshll.u32 %s4404_s12, 7 }
  0x42   : > { %3489 = vmatprep.subr.bf16.mxu1 %v3811_v1 }
  0x43   : > { %3220 = vmatmul.mubr.msk.f32.vlgmr.msra.gmra.mrb[2].mxu0 %vm682_vm2, %v4032_v19 }
  0x44   : > { %3231 = vmatmul.mubr.msk.f32.vlgmr.msra.gmra.mrb[2].mxu1 %vm682_vm2, %v4032_v19  ;;  %3485 = vmatpush3.bf16.msra.mxu0 %v3484_v30  ;;  %v3499_v30 = vpack.c.bf16 %v681_v29, %v680_v28  ;;  %v1623_v28 = vld [vmem:[%s4150_s20 + $0x70] sm:$0xff]  ;;  %v1624_v29 = vld [vmem:[%s4150_s20 + $0x78] sm:$0xff] }
  0x45   : > { %3486 = vmatprep.subr.bf16.mxu0 %v3811_v1  ;;  %3241 = vmatprep.mubr.msk.f32.mxu0 %vm3812_vm1, %v3813_v5 }
  0x46   : > { %3252 = vmatprep.mubr.msk.f32.mxu1 %vm3812_vm1, %v3813_v5  ;;  %3491 = vmatpush3.bf16.msra.mxu1 %v3490_v47 }
  0x47   : > { %3492 = vmatprep.subr.bf16.mxu1 %v3811_v1 }
  0x48   : > { %3488 = vmatpush3.bf16.msra.mxu0 %v3487_v33 }
  0x49   : > { %3255 = vmatprep.subr.mxu0 %v3813_v5 }
  0x4a   : > { %3494 = vmatpush3.bf16.msra.mxu1 %v3493_v49  ;;  %v1599_v49 = vld [vmem:[%s1598_s13] sm:$0xff] }
  0x4b   : > { %3242 = vmatmul.mubr.msk.f32.vlgmr.msra.gmra.mrb[4].mxu0 %vm682_vm2, %v4032_v19  ;;  %3270 = vmatprep.subr.mxu1 %v3813_v5 }
  0x4c   : > { %3257 = vmatprep.mubr.msk.f32.mxu0 %vm3812_vm1, %v3813_v5 }
  0x4d   : > { %3253 = vmatmul.mubr.msk.f32.vlgmr.msra.gmra.mrb[4].mxu1 %vm682_vm2, %v4032_v19 }
  0x4e   : > { %3272 = vmatprep.mubr.msk.f32.mxu1 %vm3812_vm1, %v3813_v5 }
 0x10e   : > { %v752_v34 = vpop.f32.mrb[0].mxu0 }
 0x10f   : > { %v3199_v35 = vpop.f32.mrb[1].mxu0  ;;  %v822_v36 = vpop.f32.mrb[0].mxu1 }
 0x110   : > { %v3210_v37 = vpop.f32.mrb[1].mxu1 }
 0x116   : > { %v892_v38 = vpop.f32.mrb[2].mxu0 }
 0x117   : > { %v3221_v39 = vpop.f32.mrb[3].mxu0  ;;  %3256 = vmatpush3.xpose.msk.msra.mxu0 %vm1106_vm3, %v892_v38  ;;  %v962_v40 = vpop.f32.mrb[2].mxu1 }
 0x118   : > { %v3232_v41 = vpop.f32.mrb[3].mxu1  ;;  %3260 = vmatprep.subr.mxu0 %v3813_v5 }
 0x11a   : > { %3258 = vmatmul.mubr.msk.f32.vlgmr.msra.gmra.mrb[6].mxu0 %vm1106_vm3, %v752_v34 }
 0x11b   : > { %3261 = vmatpush3.xpose.msk.msra.mxu0 %vm1106_vm3, %v962_v40  ;;  %3262 = vmatprep.mubr.msk.f32.mxu0 %vm3812_vm1, %v3813_v5 }
 0x11c   : > { %3265 = vmatprep.subr.mxu0 %v3813_v5 }
 0x11e   : > { %3263 = vmatmul.mubr.msk.f32.vlgmr.msra.gmra.mrb[8].mxu0 %vm1106_vm3, %v822_v36  ;;  %v1032_v42 = vpop.f32.mrb[4].mxu0 }
 0x11f   : > { %3267 = vmatprep.mubr.msk.f32.mxu0 %vm3812_vm1, %v3813_v5  ;;  %v3243_v43 = vpop.f32.mrb[5].mxu0  ;;  %3266 = vmatpush3.msra.mxu0 %v1032_v42 }
 0x120   : > { %3495 = vmatprep.subr.bf16.mxu0 %v3811_v1  ;;  %v1102_v16 = vpop.f32.mrb[4].mxu1 }
 0x121   : > { %v3254_v17 = vpop.f32.mrb[5].mxu1  ;;  %3271 = vmatpush3.msra.mxu1 %v1102_v16 }
 0x122   : > { %3498 = vmatprep.subr.bf16.mxu1 %v3811_v1 }
 0x1ed   : > { %v1179_v58 = vpop.f32.mrb[6].mxu0 }
 0x1ee   : > { %v1259_v59 = vmul.f32 0.25, %v1179_v58  ;;  %v3259_v60 = vpop.f32.mrb[7].mxu0  ;;  %v3508_v58 = vpack.c.bf16 %v1604_v55, %v1603_v51  ;;  %v1633_v51 = vld [vmem:[%s4184_s17 + $0x38] sm:$0xff]  ;;  %v1640_v55 = vld [vmem:[%s4184_s17 + $0x70] sm:$0xff] }
 0x1ef   : > { %v1606_v60 = vld [vmem:[%s1598_s13 + $0x38] sm:$0xff] }
 0x1f0   : > { %v1263_v61 = vsel %vm645_vm7, -1e+09, %v1259_v59  ;;  %v1605_v59 = vld [vmem:[%s1598_s13 + $0x30] sm:$0xff]  ;;  %s2604_s13 = scalar_lea.vmem %s4402_s10, %s4111_s25 }
 0x1f1   : > { %v1255_v62 = vpop.f32.mrb[8].mxu0  ;;  %v1266_v63 = vsel %vm1265_vm8, %v1263_v61, -inf }
 0x1f2   : > { %v1260_v0 = vmul.f32 0.25, %v1255_v62  ;;  %1267 = vmax.xlane.f32.xlu0 %v1266_v63  ;;  %v3264_v2 = vpop.f32.mrb[9].mxu0  ;;  %v3505_v62 = vpack.c.bf16 %v1602_v57, %v1601_v56  ;;  %v1610_v63 = vld [vmem:[%s4150_s20 + $0x8] sm:$0xff]  ;;  %v1641_v56 = vld [vmem:[%s4184_s17 + $0x78] sm:$0xff] }
 0x1f3   : > { %v1618_v2 = vld [vmem:[%s4150_s20 + $0x48] sm:$0xff] }
 0x1f4   : > { %v1264_v3 = vsel %vm645_vm7, -1e+09, %v1260_v0  ;;  %v1617_v0 = vld [vmem:[%s4150_s20 + $0x40] sm:$0xff] }
 0x1f5   : > { %v1269_v4 = vsel %vm1265_vm8, %v1264_v3, -inf }
 0x1f6   : > { %1270 = vmax.xlane.f32.xlu0 %v1269_v4 }
 0x27f   : > { %v1268_v6 = vpop.xlane.xlu0 %1267 }
 0x280   : > { %v1272_v7 = vsub.f32 %v1263_v61, %v1268_v6  ;;  %v1609_v61 = vld [vmem:[%s4150_s20] sm:$0xff]  ;;  %v3529_v6 = vpack.c.bf16 %v1618_v2, %v1617_v0 }
 0x281   : > { %v3513_v4 = vpack.c.bf16 %v1610_v63, %v1609_v61 }
 0x282   : > { %v1274_v8 = vmul.f32 1.442695, %v1272_v7 }
 0x283   : > { %v1271_v9 = vpop.xlane.xlu0 %1270 }
 0x284   : > { %3693 = vpow2.f32 %v1274_v8  ;;  %v1273_v10 = vsub.f32 %v1264_v3, %v1271_v9  ;;  %v3511_v3 = vpack.c.bf16 %v1606_v60, %v1605_v59 }
 0x286   : > { %v1276_v11 = vmul.f32 1.442695, %v1273_v10  ;;  %v1611_v10 = vld [vmem:[%s4150_s20 + $0x10] sm:$0xff] }
 0x288   : > { %3695 = vpow2.f32 %v1276_v11  ;;  %v1612_v11 = vld [vmem:[%s4150_s20 + $0x18] sm:$0xff] }
 0x289   : > { %v3517_v16 = vpack.c.bf16 %v1612_v11, %v1611_v10 }
 0x28e   : > { %v3694_v12 = vpop.eup %3693 }
 0x28f   : > { %v1278_v13 = vsel %vm1265_vm8, %v3694_v12, 0.0 }
 0x290   : > { %1279 = vadd.xlane.f32.xlu1 %v1278_v13  ;;  %v1620_v13 = vld [vmem:[%s4150_s20 + $0x58] sm:$0xff] }
 0x292   : > { %v3696_v14 = vpop.eup %3695 }
 0x293   : > { %v1281_v15 = vsel %vm1265_vm8, %v3696_v14, 0.0 }
 0x294   : > { %1282 = vadd.xlane.f32.xlu1 %v1281_v15 }
 0x31d   : > { %v1280_v18 = vpop.xlane.xlu1 %1279 }
 0x31e   : > { %3697 = vrcp.f32 %v1280_v18  ;;  %v1613_v18 = vld [vmem:[%s4150_s20 + $0x20] sm:$0xff] }
 0x321   : > { %v1283_v20 = vpop.xlane.xlu1 %1282 }
 0x322   : > { %3699 = vrcp.f32 %v1283_v20  ;;  %v1614_v20 = vld [vmem:[%s4150_s20 + $0x28] sm:$0xff] }
 0x328   : > { %v3698_v23 = vpop.eup %3697 }
 0x329   : > { %v1285_v25 = vmul.f32 %v3698_v23, %v3694_v12  ;;  %v1619_v12 = vld [vmem:[%s4150_s20 + $0x50] sm:$0xff]  ;;  %v630_v23 = vld [vmem:[%s3988_s22] sm:$0xff] }
 0x32a   : > { %v3533_v17 = vpack.c.bf16 %v1620_v13, %v1619_v12  ;;  %v646_v13 = vld [vmem:[%s603_s11] sm:$0x1] }
 0x32b   : > { %2779 = vst.msk [vmem:[%s4001_s27] sm:$0xff] %vm1265_vm8, %v1285_v25  ;;  %3268 = vmatmul.mubr.msk.f32.vlgmr.msra.gmra.mrb[10].mxu0 %vm1265_vm8, %v1285_v25  ;;  %v3537_v25 = vpack.c.bf16 %v1622_v22, %v1621_v21  ;;  %vm647_vm14 = vcmp.gt.f32.partialorder %v646_v13, 0.0  ;;  %v2687_v13 = vld [vmem:[%s2683_s30 + $0x18] sm:$0xff] }
 0x32c   : > { %v3700_v26 = vpop.eup %3699  ;;  %3497 = vmatpush3.bf16.msra.mxu0 %v3496_v24  ;;  %3279 = vmatprep.mubr.msk.f32.mxu0 %vm3812_vm1, %v3813_v5  ;;  %v3521_v24 = vpack.c.bf16 %v1614_v20, %v1613_v18 }
 0x32d   : > { %v1287_v27 = vmul.f32 %v3700_v26, %v3696_v14  ;;  %3501 = vmatprep.subr.bf16.mxu0 %v3811_v1  ;;  %v1615_v26 = vld [vmem:[%s4150_s20 + $0x30] sm:$0xff] }
 0x32f   : > { %2780 = vst.msk [vmem:[%s4001_s27 + $0x8] sm:$0xff] %vm1265_vm8, %v1287_v27  ;;  %3273 = vmatmul.mubr.msk.f32.vlgmr.msra.gmra.mrb[6].mxu1 %vm1265_vm8, %v1287_v27  ;;  %v1616_v27 = vld [vmem:[%s4150_s20 + $0x38] sm:$0xff]  ;;  %s1642_s27 = scalar_lea.vmem %s4401_s8, %s4111_s25  ;;  %s4405_s25 = sld [smem:[#allocation6_spill]] }
 0x330   : > { %3286 = vmatprep.mubr.msk.f32.mxu1 %vm3812_vm1, %v3813_v5  ;;  %3500 = vmatpush3.bf16.msra.mxu1 %v3499_v30  ;;  %v3525_v30 = vpack.c.bf16 %v1616_v27, %v1615_v26 }
 0x331   : > { %3507 = vmatprep.subr.bf16.mxu1 %v3811_v1 }
 0x335   : > { %s4409_s19 = sand.u32 1, %s4405_s25  }
 0x336   : > { %s2784_s8 = scalar_lea.sflag [#allocation3], %s4409_s19 }
 0x3fe   : > { %v1357_v31 = vpop.f32.mrb[10].mxu0 }
 0x3ff   : > { %v3269_v32 = vpop.f32.mrb[11].mxu0  ;;  %3280 = vmatmul.mubr.msk.f32.vlgmr.msra.gmra.mrb[12].mxu0 %vm1106_vm3, %v1357_v31  ;;  %v3541_v31 = vpack.c.bf16 %v1624_v29, %v1623_v28 }
 0x400   : > { %3297 = vmatprep.mubr.msk.f32.mxu0 %vm3812_vm1, %v3813_v5  ;;  %v1626_v32 = vld [vmem:[%s4184_s17] sm:$0xff] }
 0x402   : > { %v1430_v33 = vpop.f32.mrb[6].mxu1 }
 0x403   : > { %v3274_v34 = vpop.f32.mrb[7].mxu1  ;;  %3287 = vmatmul.mubr.msk.f32.vlgmr.msra.gmra.mrb[8].mxu1 %vm1106_vm3, %v1430_v33  ;;  %v1627_v33 = vld [vmem:[%s4184_s17 + $0x8] sm:$0xff] }
 0x404   : > { %3308 = vmatprep.mubr.msk.f32.mxu1 %vm3812_vm1, %v3813_v5  ;;  %3509 = vmatpush3.bf16.msra.mxu1 %v3508_v58  ;;  %v1634_v34 = vld [vmem:[%s4184_s17 + $0x40] sm:$0xff]  ;;  %v3573_v58 = vpack.c.bf16 %v1641_v56, %v1640_v55 }
 0x405   : > { %3510 = vmatprep.subr.bf16.mxu1 %v3811_v1 }
 0x408   : > { %3512 = vmatpush3.bf16.msra.mxu1 %v3511_v3 }
 0x409   : > { %3530 = vmatprep.subr.bf16.mxu1 %v3529_v6 }
 0x4d2   : > { %v1503_v35 = vpop.f32.mrb[12].mxu0 }
 0x4d3   : > { %v3281_v36 = vpop.f32.mrb[13].mxu0  ;;  %v1580_v38 = vsel %vm682_vm2, %v1503_v35, 0.0  ;;  %v1635_v35 = vld [vmem:[%s4184_s17 + $0x48] sm:$0xff] }
 0x4d4   : > { %v3545_v36 = vpack.c.bf16 %v1627_v33, %v1626_v32 }
 0x4d6   : > { %v1576_v37 = vpop.f32.mrb[8].mxu1 }
 0x4d7   : > { %v1581_v39 = vsel %vm682_vm2, %v1576_v37, 0.0  ;;  %v3288_v40 = vpop.f32.mrb[9].mxu1  ;;  %v3561_v37 = vpack.c.bf16 %v1635_v35, %v1634_v34 }
 0x4d8   : > { %v1582_v41 = vadd.f32 %v1581_v39, %v1580_v38  ;;  %v631_v38 = vld [vmem:[%s3988_s22 + $0x8] sm:$0x3]  ;;  %v1628_v39 = vld [vmem:[%s4184_s17 + $0x10] sm:$0xff]  ;;  %v1629_v40 = vld [vmem:[%s4184_s17 + $0x18] sm:$0xff]  ;;  %s4407_s22 = sld [smem:[#allocation24_spill]] }
 0x4da   : > { %v1583_v42 = vadd.f32 %v1582_v41, %v4032_v19  ;;  %v3502_v19 = vpack.c.bf16 %v1600_v50, %v1599_v49  ;;  %v1636_v41 = vld [vmem:[%s4184_s17 + $0x50] sm:$0xff]  ;;  %v1639_v49 = vld [vmem:[%s4184_s17 + $0x68] sm:$0xff] }
 0x4db   : > { %v1632_v50 = vld [vmem:[%s4184_s17 + $0x30] sm:$0xff] }
 0x4dc   : > { %v1584_v43 = vsel %vm682_vm2, %v1583_v42, 0.0  ;;  %3503 = vmatpush3.bf16.msra.mxu0 %v3502_v19  ;;  %v3557_v57 = vpack.c.bf16 %v1633_v51, %v1632_v50 }
 0x4dd   : > { %1585 = vadd.xlane.f32.xlu0 %v1584_v43  ;;  %3504 = vmatprep.subr.bf16.mxu0 %v3811_v1  ;;  %v1637_v43 = vld [vmem:[%s4184_s17 + $0x58] sm:$0xff] }
 0x4de   : > { %s4408_s11 = smov %s4407_s22  ;;  %s4287_s24 = scalar_lea.hbm %s4407_s22, %s3057_s29 }
 0x4e0   : > { %3506 = vmatpush3.bf16.msra.mxu0 %v3505_v62 }
 0x4e1   : > { %3514 = vmatprep.subr.bf16.mxu0 %v3513_v4 }
 0x56a   : > { %v1586_v44 = vpop.xlane.xlu0 %1585 }
 0x56b   : > { %v1588_v45 = vmul.f32 0.03125, %v1586_v44  ;;  %v3565_v44 = vpack.c.bf16 %v1637_v43, %v1636_v41 }
 0x56d   : > { %v1589_v46 = vsub.f32 %v1583_v42, %v1588_v45  ;;  %v3549_v42 = vpack.c.bf16 %v1629_v40, %v1628_v39  ;;  %v1630_v45 = vld [vmem:[%s4184_s17 + $0x20] sm:$0xff]  ;;  %v1644_v40 = vld [vmem:[%s1642_s27 + $0x8] sm:$0xff] }
 0x56e   : > { %v1643_v39 = vld [vmem:[%s1642_s27] sm:$0xff] }
 0x56f   : > { %v1590_v47 = vmul.f32 %v1589_v46, %v1589_v46 }
 0x571   : > { %v1591_v48 = vsel %vm682_vm2, %v1590_v47, 0.0  ;;  %v1638_v47 = vld [vmem:[%s4184_s17 + $0x60] sm:$0xff] }
 0x572   : > { %1592 = vadd.xlane.f32.xlu1 %v1591_v48  ;;  %v3569_v19 = vpack.c.bf16 %v1639_v49, %v1638_v47 }
 0x5ff   : > { %v1593_v7 = vpop.xlane.xlu1 %1592 }
 0x600   : > { %v1594_v8 = vmul.f32 0.03125, %v1593_v7 }
 0x602   : > { %v1595_v9 = vadd.f32 1e-05, %v1594_v8 }
 0x604   : > { %3701 = vrsqrt.f32 %v1595_v9 }
 0x60e   : > { %v3702_v14 = vpop.eup %3701 }
 0x60f   : > { %v4162_v15 = vmul.f32 %v3702_v14, %v1589_v46  ;;  %v1631_v46 = vld [vmem:[%s4184_s17 + $0x28] sm:$0xff]  ;;  %v2257_v14 = vsel %vm647_vm14, 1, %v3814_v54 }
 0x610   : > { %v3553_v48 = vpack.c.bf16 %v1631_v46, %v1630_v45  ;;  %v3594_v45 = vpack.c.bf16 %v1644_v40, %v1643_v39 }
 0x611   : > { %3298 = vmatmul.mubr.msk.f32.vlgmr.msra.gmra.mrb[14].mxu0 %vm682_vm2, %v4162_v15  ;;  %3309 = vmatmul.mubr.msk.f32.vlgmr.msra.gmra.mrb[10].mxu1 %vm682_vm2, %v4162_v15 }
 0x612   : > { %3516 = vmatpush3.bf16.msra.mxu0 %v3513_v4  ;;  %3532 = vmatpush3.bf16.msra.mxu1 %v3529_v6 }
 0x613   : > { %3518 = vmatprep.subr.bf16.mxu0 %v3517_v16  ;;  %3534 = vmatprep.subr.bf16.mxu1 %v3533_v17 }
 0x614   : > { %3327 = vmatprep.mubr.msk.f32.mxu0 %vm1790_vm9, %v630_v23  ;;  %3346 = vmatprep.mubr.msk.f32.mxu1 %vm1790_vm9, %v630_v23 }
 0x616   : > { %3520 = vmatpush3.bf16.msra.mxu0 %v3517_v16  ;;  %3536 = vmatpush3.bf16.msra.mxu1 %v3533_v17  ;;  %v2261_v16 = vrot.slane %v2257_v14, %v642_v53 }
 0x617   : > { %3522 = vmatprep.subr.bf16.mxu0 %v3521_v24  ;;  %3538 = vmatprep.subr.bf16.mxu1 %v3537_v25 }
 0x618   : > { %vm2262_vm15 = vcmp.eq.s32.totalorder %v2261_v16, 1  ;;  %v2688_v16 = vld [vmem:[%s2683_s30 + $0x20] sm:$0xff] }
 0x61a   : > { %3524 = vmatpush3.bf16.msra.mxu0 %v3521_v24  ;;  %3540 = vmatpush3.bf16.msra.mxu1 %v3537_v25 }
 0x61b   : > { %3526 = vmatprep.subr.bf16.mxu0 %v3525_v30  ;;  %3542 = vmatprep.subr.bf16.mxu1 %v3541_v31 }
 0x61e   : > { %3528 = vmatpush3.bf16.msra.mxu0 %v3525_v30  ;;  %3544 = vmatpush3.bf16.msra.mxu1 %v3541_v31 }
 0x61f   : > { %3546 = vmatprep.subr.bf16.mxu0 %v3545_v36  ;;  %3562 = vmatprep.subr.bf16.mxu1 %v3561_v37 }
 0x621   : > { %3328 = vmatmul.mubr.msk.f32.vlgmr.msra.gmra.mrb[16].mxu0 %vm1790_vm9, %v631_v38  ;;  %3347 = vmatmul.mubr.msk.f32.vlgmr.msra.gmra.mrb[12].mxu1 %vm1790_vm9, %v631_v38 }
 0x622   : > { %3548 = vmatpush3.bf16.msra.mxu0 %v3545_v36  ;;  %3564 = vmatpush3.bf16.msra.mxu1 %v3561_v37  ;;  %v1645_v37 = vld [vmem:[%s1642_s27 + $0x10] sm:$0xff] }
 0x623   : > { %3365 = vmatprep.mubr.msk.f32.mxu0 %vm1790_vm9, %v630_v23  ;;  %3384 = vmatprep.mubr.msk.f32.mxu1 %vm1790_vm9, %v630_v23 }
 0x624   : > { %3550 = vmatprep.subr.bf16.mxu0 %v3549_v42  ;;  %3566 = vmatprep.subr.bf16.mxu1 %v3565_v44 }
 0x626   : > { %3552 = vmatpush3.bf16.msra.mxu0 %v3549_v42  ;;  %3568 = vmatpush3.bf16.msra.mxu1 %v3565_v44 }
 0x627   : > { %3554 = vmatprep.subr.bf16.mxu0 %v3553_v48  ;;  %3570 = vmatprep.subr.bf16.mxu1 %v3569_v19 }
 0x62a   : > { %3556 = vmatpush3.bf16.msra.mxu0 %v3553_v48  ;;  %3572 = vmatpush3.bf16.msra.mxu1 %v3569_v19 }
 0x62b   : > { %3558 = vmatprep.subr.bf16.mxu0 %v3557_v57  ;;  %3574 = vmatprep.subr.bf16.mxu1 %v3573_v58 }
 0x62e   : > { %3560 = vmatpush3.bf16.msra.mxu0 %v3557_v57  ;;  %3576 = vmatpush3.bf16.msra.mxu1 %v3573_v58 }
 0x62f   : > { %3577 = vmatprep.subr.bf16.mxu0 %v3811_v1  ;;  %3581 = vmatprep.subr.bf16.mxu1 %v3811_v1 }
 0x631   : > { %3366 = vmatmul.mubr.msk.f32.vlgmr.msra.gmra.mrb[18].mxu0 %vm1790_vm9, %v631_v38  ;;  %3385 = vmatmul.mubr.msk.f32.vlgmr.msra.gmra.mrb[14].mxu1 %vm1790_vm9, %v631_v38  ;;  %v1646_v38 = vld [vmem:[%s1642_s27 + $0x18] sm:$0xff]  ;;  %s3715_s27 = scalar_lea.vmem %s4289_s21, 128 }
 0x632   : > { %3391 = vmatprep.mubr.msk.f32.mxu0 %vm3812_vm1, %v3813_v5  ;;  %3398 = vmatprep.mubr.msk.f32.mxu1 %vm3812_vm1, %v3813_v5  ;;  %v3597_v42 = vpack.c.bf16 %v1646_v38, %v1645_v37  ;;  %p3716_p1 = scmp.ne.s32.totalorder %s4289_s21, %s3715_s27 }
 0x634   : > { %p3717_p2 = pnand %p3716_p1, %p3951_p3 }
 0x636   : > { %p3718_p4 = pneg %p3717_p2 }
 0x6e4   : > { %v1716_v59 = vpop.f32.mrb[14].mxu0  ;;  %v1786_v60 = vpop.f32.mrb[10].mxu1 }
 0x6e5   : > { %v3299_v61 = vpop.f32.mrb[15].mxu0  ;;  %v3310_v62 = vpop.f32.mrb[11].mxu1 }
 0x6f4   : > { %v3329_v63 = vpop.f32.mrb[16].mxu0  ;;  %v3348_v0 = vpop.f32.mrb[12].mxu1 }
 0x6f5   : > { %v1863_v2 = vpop.f32.mrb[17].mxu0  ;;  %v1938_v3 = vpop.f32.mrb[13].mxu1 }
 0x6f6   : > { %v3578_v4 = vpack.c.bf16 %v3329_v63, %v1863_v2  ;;  %v3582_v6 = vpack.c.bf16 %v3348_v0, %v1938_v3  ;;  %v2605_v3 = vld [vmem:[%s2604_s13] sm:$0xff] }
 0x6f8   : > { %3580 = vmatpush3.bf16.xpose.msk.msra.mxu0 %vm3579_vm10, %v3578_v4  ;;  %3584 = vmatpush3.bf16.xpose.msk.msra.mxu1 %vm3579_vm10, %v3582_v6  ;;  %v2606_v4 = vld [vmem:[%s2604_s13 + $0x8] sm:$0xff]  ;;  %v2607_v6 = vld [vmem:[%s2604_s13 + $0x10] sm:$0xff] }
 0x6f9   : > { %3585 = vmatprep.subr.bf16.mxu0 %v3811_v1  ;;  %3589 = vmatprep.subr.bf16.mxu1 %v3811_v1 }
 0x6ff   : > { %3392 = vmatmul.mubr.msk.f32.vlgmr.msra.gmra.mrb[20].mxu0 %vm1106_vm3, %v1716_v59  ;;  %3399 = vmatmul.mubr.msk.f32.vlgmr.msra.gmra.mrb[16].mxu1 %vm1106_vm3, %v1786_v60 }
 0x700   : > { %3405 = vmatprep.mubr.msk.f32.mxu0 %vm3812_vm1, %v3813_v5  ;;  %3412 = vmatprep.mubr.msk.f32.mxu1 %vm3812_vm1, %v3813_v5 }
 0x704   : > { %v3367_v7 = vpop.f32.mrb[18].mxu0  ;;  %v3386_v8 = vpop.f32.mrb[14].mxu1 }
 0x705   : > { %v2013_v9 = vpop.f32.mrb[19].mxu0  ;;  %v2088_v11 = vpop.f32.mrb[15].mxu1 }
 0x706   : > { %v3586_v10 = vpack.c.bf16 %v3367_v7, %v2013_v9  ;;  %v3590_v12 = vpack.c.bf16 %v3386_v8, %v2088_v11  ;;  %v3600_v7 = vpack.c.bf16 %v2606_v4, %v2605_v3  ;;  %v2684_v9 = vld [vmem:[%s2683_s30] sm:$0xff]  ;;  %v2686_v11 = vld [vmem:[%s2683_s30 + $0x10] sm:$0xff] }
 0x707   : > { %v3609_v14 = vpack.c.bf16 %v2687_v13, %v2686_v11 }
 0x708   : > { %3588 = vmatpush3.bf16.msk.msra.mxu0 %vm3587_vm13, %v3586_v10  ;;  %3592 = vmatpush3.bf16.msk.msra.mxu1 %vm3587_vm13, %v3590_v12  ;;  %v2685_v10 = vld [vmem:[%s2683_s30 + $0x8] sm:$0xff] }
 0x709   : > { %3593 = vmatprep.subr.bf16.mxu0 %v3811_v1  ;;  %3596 = vmatprep.subr.bf16.mxu1 %v3811_v1  ;;  %v3606_v12 = vpack.c.bf16 %v2685_v10, %v2684_v9 }
 0x7d2   : > { %v2172_v17 = vpop.f32.mrb[20].mxu0  ;;  %v2251_v18 = vpop.f32.mrb[16].mxu1 }
 0x7d3   : > { %v2255_v20 = vmul.f32 0.25, %v2172_v17  ;;  %v2256_v21 = vmul.f32 0.25, %v2251_v18  ;;  %v3393_v22 = vpop.f32.mrb[21].mxu0  ;;  %v3400_v23 = vpop.f32.mrb[17].mxu1  ;;  %v2689_v17 = vld [vmem:[%s2683_s30 + $0x28] sm:$0xff] }
 0x7d4   : > { %v3612_v18 = vpack.c.bf16 %v2689_v17, %v2688_v16 }
 0x7d5   : > { %v2264_v24 = vsel %vm2262_vm15, -1e+09, %v2256_v21  ;;  %v2263_v25 = vsel %vm2262_vm15, -1e+09, %v2255_v20 }
 0x7d6   : > { %v2269_v26 = vsel %vm2265_vm0, %v2264_v24, -inf  ;;  %v2266_v27 = vsel %vm2265_vm0, %v2263_v25, -inf }
 0x7d7   : > { %2270 = vmax.xlane.f32.xlu1 %v2269_v26  ;;  %2267 = vmax.xlane.f32.xlu0 %v2266_v27  ;;  %v2691_v26 = vld [vmem:[%s2683_s30 + $0x38] sm:$0xff] }
 0x864   : > { %v2271_v54 = vpop.xlane.xlu1 %2270  ;;  %v2268_v28 = vpop.xlane.xlu0 %2267 }
 0x865   : > { %v2273_v52 = vsub.f32 %v2264_v24, %v2271_v54  ;;  %v2272_v53 = vsub.f32 %v2263_v25, %v2268_v28  ;;  %v2690_v25 = vld [vmem:[%s2683_s30 + $0x30] sm:$0xff] }
 0x866   : > { %v3615_v27 = vpack.c.bf16 %v2691_v26, %v2690_v25 }
 0x867   : > { %v2276_v29 = vmul.f32 1.442695, %v2273_v52  ;;  %v2274_v30 = vmul.f32 1.442695, %v2272_v53 }
 0x869   : > { %3703 = vpow2.f32 %v2276_v29 }
 0x86a   : > { %3705 = vpow2.f32 %v2274_v30 }
 0x873   : > { %v3704_v31 = vpop.eup %3703 }
 0x874   : > { %v3706_v32 = vpop.eup %3705  ;;  %v2281_v33 = vsel %vm2265_vm0, %v3704_v31, 0.0 }
 0x875   : > { %2282 = vadd.xlane.f32.xlu1 %v2281_v33  ;;  %v2278_v34 = vsel %vm2265_vm0, %v3706_v32, 0.0 }
 0x876   : > { %2279 = vadd.xlane.f32.xlu0 %v2278_v34 }
 0x902   : > { %v2283_v35 = vpop.xlane.xlu1 %2282 }
 0x903   : > { %3707 = vrcp.f32 %v2283_v35  ;;  %v2280_v36 = vpop.xlane.xlu0 %2279 }
 0x904   : > { %3709 = vrcp.f32 %v2280_v36 }
 0x90d   : > { %v3708_v41 = vpop.eup %3707 }
 0x90e   : > { %v3710_v43 = vpop.eup %3709  ;;  %v2287_v44 = vmul.f32 %v3708_v41, %v3704_v31 }
 0x90f   : > { %v2285_v46 = vmul.f32 %v3710_v43, %v3706_v32 }
 0x910   : > { %2782 = vst.msk [vmem:[%s4006_s14 + $0x8] sm:$0xff] %vm2265_vm0, %v2287_v44  ;;  %3413 = vmatmul.mubr.msk.f32.vlgmr.msra.gmra.mrb[18].mxu1 %vm2265_vm0, %v2287_v44 }
 0x911   : > { %2781 = vst.msk [vmem:[%s4006_s14] sm:$0xff] %vm2265_vm0, %v2285_v46  ;;  %3406 = vmatmul.mubr.msk.f32.vlgmr.msra.gmra.mrb[22].mxu0 %vm2265_vm0, %v2285_v46  ;;  %3598 = vmatpush3.bf16.msra.mxu1 %v3597_v42  ;;  %s3816_s14 = smov [#allocation2]  }
 0x912   : > { %3595 = vmatpush3.bf16.msra.mxu0 %v3594_v45  ;;  %3419 = vmatprep.mubr.msk.f32.mxu0 %vm3812_vm1, %v3813_v5  ;;  %s3719_s9 = sshll.u32 %s3816_s14, 4  ;;  %s3720_s9 = int_to_ptr.vmem [resolvable:$false] %s3719_s9 }
 0x913   : > { %3426 = vmatprep.mubr.msk.f32.mxu1 %vm3812_vm1, %v3813_v5  ;;  %3599 = vmatprep.subr.bf16.mxu0 %v3811_v1  ;;  %s3721_s10 = scalar_lea.vmem %s3720_s9, 256  ;;  %p3722_p5 = scmp.lt.s32.totalorder %s4289_s21, %s3720_s9 }
 0x914   : > { %3605 = vmatprep.subr.bf16.mxu1 %v3811_v1  ;;  %p3723_p6 = scmp.lt.s32.totalorder %s3721_s10, %s3715_s27 }
 0x916   : > { %p3724_p7 = por %p3723_p6, %p3722_p5 }
 0x918   : > { %p3725_p8 = pnand %p3724_p7, %p3718_p4 }
 0x9e3   : > { %v2437_v47 = vpop.f32.mrb[18].mxu1 }
 0x9e4   : > { %v2361_v48 = vpop.f32.mrb[22].mxu0  ;;  %v3414_v49 = vpop.f32.mrb[19].mxu1  ;;  %3427 = vmatmul.mubr.msk.f32.vlgmr.msra.gmra.mrb[20].mxu1 %vm1106_vm3, %v2437_v47 }
 0x9e5   : > { %v3407_v50 = vpop.f32.mrb[23].mxu0  ;;  %3420 = vmatmul.mubr.msk.f32.vlgmr.msra.gmra.mrb[24].mxu0 %vm1106_vm3, %v2361_v48  ;;  %3456 = vmatprep.mubr.msk.f32.mxu1 %vm3812_vm1, %v3813_v5 }
 0x9e6   : > { %3437 = vmatprep.mubr.msk.f32.mxu0 %vm3812_vm1, %v3813_v5  ;;  %3601 = vmatpush3.bf16.msra.mxu0 %v3600_v7 }
 0x9e7   : > { %3602 = vmatprep.subr.bf16.mxu0 %v3811_v1  ;;  %3607 = vmatpush3.bf16.msra.mxu1 %v3606_v12 }
 0x9e8   : > { %3608 = vmatprep.subr.bf16.mxu1 %v3811_v1 }
 0x9eb   : > { %3610 = vmatpush3.bf16.msra.mxu1 %v3609_v14 }
 0x9ec   : > { %3611 = vmatprep.subr.bf16.mxu1 %v3811_v1 }
 0x9ef   : > { %3613 = vmatpush3.bf16.msra.mxu1 %v3612_v18 }
 0x9f0   : > { %3614 = vmatprep.subr.bf16.mxu1 %v3811_v1 }
 0x9f3   : > { %3616 = vmatpush3.bf16.msra.mxu1 %v3615_v27 }
 0xab7   : > { %v2583_v51 = vpop.f32.mrb[20].mxu1 }
 0xab8   : > { %v2510_v19 = vpop.f32.mrb[24].mxu0  ;;  %v2588_v55 = vsel %vm682_vm2, %v2583_v51, 0.0  ;;  %v3428_v56 = vpop.f32.mrb[21].mxu1 }
 0xab9   : > { %v2587_v57 = vsel %vm682_vm2, %v2510_v19, 0.0  ;;  %v3421_v58 = vpop.f32.mrb[25].mxu0 }
 0xaba   : > { %v2589_v59 = vadd.f32 %v2588_v55, %v2587_v57 }
 0xabc   : > { %v2590_v60 = vadd.f32 %v2589_v59, %v4162_v15  ;;  %v2608_v15 = vld [vmem:[%s2604_s13 + $0x18] sm:$0xff] }
 0xabd   : > { %v3603_v8 = vpack.c.bf16 %v2608_v15, %v2607_v6 }
 0xabe   : > { %v2591_v61 = vsel %vm682_vm2, %v2590_v60, 0.0 }
 0xabf   : > { %2592 = vadd.xlane.f32.xlu0 %v2591_v61  ;;  %3604 = vmatpush3.bf16.msra.mxu0 %v3603_v8 }
 0xb4c   : > { %v2593_v62 = vpop.xlane.xlu0 %2592 }
 0xb4d   : > { %v2594_v63 = vmul.f32 0.03125, %v2593_v62 }
 0xb4f   : > { %v2595_v0 = vsub.f32 %v2590_v60, %v2594_v63 }
 0xb51   : > { %v2596_v5 = vmul.f32 %v2595_v0, %v2595_v0 }
 0xb53   : > { %v2597_v2 = vsel %vm682_vm2, %v2596_v5, 0.0 }
 0xb54   : > { %2598 = vadd.xlane.f32.xlu1 %v2597_v2 }
 0xbe1   : > { %v2599_v20 = vpop.xlane.xlu1 %2598 }
 0xbe2   : > { %v2600_v21 = vmul.f32 0.03125, %v2599_v20 }
 0xbe4   : > { %v2601_v22 = vadd.f32 1e-05, %v2600_v21 }
 0xbe6   : > { %3711 = vrsqrt.f32 %v2601_v22 }
 0xbf0   : > { %v3712_v23 = vpop.eup %3711 }
 0xbf1   : > { %v2603_v24 = vmul.f32 %v3712_v23, %v2595_v0 }
 0xbf3   : > { %3438 = vmatmul.mubr.msk.f32.vlgmr.msra.gmra.mrb[26].mxu0 %vm682_vm2, %v2603_v24 }
 0xcc6   : > { %v2678_v54 = vpop.f32.mrb[26].mxu0 }
 0xcc7   : > { %v2682_v28 = vmax.f32 %v2678_v54, 0.0  ;;  %v3439_v52 = vpop.f32.mrb[27].mxu0 }
 0xcc9   : > { %3457 = vmatmul.mubr.msk.f32.vlgmr.msra.gmra.mrb[22].mxu1 %vm1790_vm9, %v2682_v28 }
 0xd9c   : > { %v2761_v53 = vpop.f32.mrb[22].mxu1 }
 0xd9d   : > { %v2762_v1 = vadd.f32 %v2761_v53, %v2603_v24  ;;  %v3458_v29 = vpop.f32.mrb[23].mxu1 }
 0xd9f   : > { %v2765_v30 = vsel %vm682_vm2, %v2762_v1, 0.0 }
 0xda0   : > { %2766 = vadd.xlane.f32.xlu0 %v2765_v30 }
 0xe2d   : > { %v2767_v31 = vpop.xlane.xlu0 %2766 }
 0xe2e   : > { %v2768_v32 = vmul.f32 0.03125, %v2767_v31 }
 0xe30   : > { %v2769_v33 = vsub.f32 %v2762_v1, %v2768_v32 }
 0xe32   : > { %v2770_v34 = vmul.f32 %v2769_v33, %v2769_v33 }
 0xe34   : > { %v2771_v35 = vsel %vm682_vm2, %v2770_v34, 0.0 }
 0xe35   : > { %2772 = vadd.xlane.f32.xlu1 %v2771_v35 }
 0xec2   : > { %v2773_v36 = vpop.xlane.xlu1 %2772 }
 0xec3   : > { %v2774_v37 = vmul.f32 0.03125, %v2773_v36 }
 0xec5   : > { %v2775_v38 = vadd.f32 1e-05, %v2774_v37 }
 0xec7   : > { %3713 = vrsqrt.f32 %v2775_v38 }
 0xed1   : > { %v3714_v39 = vpop.eup %3713 }
 0xed2   : > { %v2777_v40 = vmul.f32 %v3714_v39, %v2769_v33 }
 0xed4   : > { %2778 = vst.msk [vmem:[%s4008_s18] sm:$0xff] %vm682_vm2, %v2777_v40 }
 0xed5   : > { %3728 = shalt.err (!%p3725_p8)
}
 0xed6   : > { %s3729_s18 = scalar_lea.hbm %s4287_s24, 128  ;;  %s3733_s26 = scalar_lea.hbm %s4408_s11, 256 }
 0xed7   : > { %p3730_p10 = scmp.ne.s32.totalorder %s4287_s24, %s3729_s18  ;;  %p3734_p13 = scmp.lt.u32.totalorder %s4287_s24, %s4408_s11 }
 0xed8   : > { %p3735_p0 = scmp.lt.u32.totalorder %s3733_s26, %s3729_s18  ;;  %p3737_p2 = scmp.lt.u32.totalorder %s3729_s18, %s4287_s24 }
 0xed9   : > { %p3731_p11 = pnand %p3730_p10, %p3951_p3 }
 0xeda   : > { %p3736_p1 = por %p3735_p0, %p3734_p13 }
 0xedb   : > { %p3732_p12 = pneg %p3731_p11 }
 0xedc   : > { %p3738_p4 = por %p3737_p2, %p3736_p1 }
 0xede   : > { %p3739_p5 = pnand %p3738_p4, %p3732_p12 }
 0xee0   : > { %3742 = shalt.err (!%p3739_p5)
}
 0xee1   : > { %3617 = dma.vmem_to_hbm [thread:$0]  (%p3951_p3), %s4289_s21, 128, %s4287_s24, %s2784_s8  }
 0xee2 PF: > { %s4410_s12 = sld [smem:[#allocation11_spill]]  ;;  %s4411_s25 = sld [smem:[#allocation5_spill]] }
 0xee8   : > { %p3623_p6 = scmp.ge.s32.totalorder %s4410_s12, 2  ;;  %s2833_s0 = sand.u32 1, %s4411_s25  }
 0xee9   : > { %s2834_s17 = scalar_lea.sflag [#allocation3], %s2833_s0 }
 0xeea   : > { %p3620_p7 = pnand %p3623_p6, %p3961_p9 }
 0xeec   : > { %3776 = dma.done.wait (!%p3620_p7), %s2834_s17, 128  }
 0xeed   : > { %3778 = vsyncadd (!%p3620_p7), %s2834_s17, 4294967168  ;;  %s30_s28 = sadd.s32 1, %s4410_s12   ;;  %s4413_s21 = sld [smem:[#allocation6_spill]] }
 0xeee   : > { %p27_p8 = scmp.ge.s32.totalorder %s30_s28, 6   ;;  %s4414_s22 = sld [smem:[#allocation7_spill]] }
 0xeef   : > { %s4415_s23 = sld [smem:[#allocation16_spill]]  ;;  %s4416_s24 = sld [smem:[#allocation9_spill]] }
 0xef0   : > { %s4417_s25 = sld [smem:[#allocation10_spill]]  ;;  %s4418_s26 = sld [smem:[#allocation12_spill]] }
 0xef1   : > { %s4419_s27 = sld [smem:[#allocation14_spill]]  ;;  %29 = sbr.rel (!%p27_p8) target bundleno = 14 (0xe), region = 158 }
 0xef8   :  { %2859 = vsyncpa [#allocation3], 1 }
 0xef9   :  { %2861 = vsyncpa [#allocation3 + $0x1], 1 }

</bundles_post_ra>
